<compile_context>
chip_gen: v5e
topology: v5e:2x2
jax: 0.10.0
libtpu: 0.0.40
codegen_flags: <defaults>
</compile_context>

<pallas_src>
import functools
import math

import numpy as np
import jax
import jax.numpy as jnp
from jax.experimental import pallas as pl
from jax.experimental.pallas import tpu as pltpu

BN_EPS = 1e-5
LN_EPS = 1e-5


# ----------------------------- small helpers -----------------------------

def _bf16(x):
    return x.astype(jnp.bfloat16)


def _batch_norm(x, gamma, beta, n_rows):
    """MaskedBatchNorm1d with lens=None: batch stats over all rows, computed in one
    fused pass (sum + sum-of-squares in f32, E[x^2]-E[x]^2 variance)."""
    # TODO(synk): running-stats eval mode of MaskedBatchNorm1d is not implemented.
    inv_n = 1.0 / float(n_rows)
    s1 = jnp.sum(x, axis=0, keepdims=True)
    s2 = jnp.sum(x * x, axis=0, keepdims=True)
    mu = s1 * inv_n
    var = jnp.maximum(s2 * inv_n - mu * mu, 0.0)
    return (x - mu) * jax.lax.rsqrt(var + BN_EPS) * gamma + beta


def _layer_norm(x, gamma, beta):
    mu = jnp.mean(x, axis=-1, keepdims=True)
    var = jnp.mean(jnp.square(x - mu), axis=-1, keepdims=True)
    return (x - mu) * jax.lax.rsqrt(var + LN_EPS) * gamma + beta


def _temporal_conv(x, w_ref, b_ref, t_idx, seq_len, ksz, pad):
    """Conv1d along the time (sublane) axis as K accumulating matmuls:
         y[r] = sum_k mask(r, k) * x[r + k - pad] @ W[k] + b
    Shifts use pltpu.roll (XLU slot, ~free next to the MXU work) plus an iota
    boundary mask, instead of shift matrices / im2col: no O(rows^2) MXU FLOPs and
    no (K, rows, rows) VMEM blow-up.  Zero padding and batch boundaries are both
    handled by the mask (rows whose within-sequence source index falls outside
    [0, seq_len) contribute zero)."""
    n_rows = x.shape[0]
    acc = None
    for k in range(ksz):
        off = k - pad
        if off == 0:
            tap = _bf16(x)
        else:
            rolled = pltpu.roll(x, shift=(-off) % n_rows, axis=0)
            src = t_idx + off
            valid = (src >= 0) & (src < seq_len)
            tap = _bf16(jnp.where(valid, rolled, 0.0))
        term = jnp.dot(tap, w_ref[k], preferred_element_type=jnp.float32)
        acc = term if acc is None else acc + term
    return acc + b_ref[...]


# ----------------------------- Pallas kernels -----------------------------

def _prenet_kernel(*refs, conv_kernel_sizes, conv_paddings, B, T, Tm):
    """conv_initial (1x1) -> [Conv1d + MaskedBN + ReLU]* -> ReLU -> out BN
    -> slice to Tm -> + sinusoidal positional encoding.  Single program because
    the BatchNorm statistics reduce over the whole (B, T) extent."""
    # TODO(synk): row-tiled two-pass-BN prenet (to feed both v7x TensorCores) not implemented.
    it = iter(refs)
    x_ref = next(it)                                   # (B, Cin, T) f32
    ciw_ref = next(it)                                 # (Cin, H)    bf16
    cib_ref = next(it)                                 # (1, H)      f32
    conv_refs = [tuple(next(it) for _ in range(4)) for _ in conv_kernel_sizes]
    obn_g_ref = next(it)                               # (1, H) f32
    obn_b_ref = next(it)                               # (1, H) f32
    pos_ref = next(it)                                 # (Tm, H) f32
    out_ref = next(it)                                 # (B, Tm, H) bf16

    R = B * T

    # 1x1 conv_initial; the (B, Cin, T) -> (B*T, H) layout change is folded into the
    # matmul (contract Cin of x[b] directly) -- no wrapper-side HBM transpose pass.
    ciw = ciw_ref[...]
    rows = [
        jax.lax.dot_general(_bf16(x_ref[b]), ciw, (((0,), (0,)), ((), ())),
                            preferred_element_type=jnp.float32)
        for b in range(B)
    ]
    h = jnp.concatenate(rows, axis=0) + cib_ref[...]   # (B*T, H) f32

    # within-sequence time index of every row (for conv boundary masking)
    t_in_seq = jax.lax.broadcasted_iota(jnp.int32, (R, 1), 0) % T

    # ConvBNBlk stack: Conv1d (roll-based) -> MaskedBN -> ReLU
    for (ksz, pad), (w_ref, b_ref, bng_ref, bnb_ref) in zip(
            zip(conv_kernel_sizes, conv_paddings), conv_refs):
        y = _temporal_conv(h, w_ref, b_ref, t_in_seq, T, ksz, pad)
        h = jnp.maximum(_batch_norm(y, bng_ref[...], bnb_ref[...], R), 0.0)

    # h = activation(h); h = out_batch_norm(h)
    h = _batch_norm(jnp.maximum(h, 0.0), obn_g_ref[...], obn_b_ref[...], R)

    # slice to Tm, add the sinusoidal positional encoding, emit bf16 (halves the
    # HBM round trip into kernel 2)
    pos = pos_ref[...]
    for b in range(B):
        out_ref[b] = (h[b * T:b * T + Tm, :] + pos).astype(out_ref.dtype)


def _fft_stack_kernel(dec_ref, wq_ref, wk_ref, wv_ref, bq_ref, bk_ref, bv_ref,
                      fcw_ref, fcb_ref, ln1g_ref, ln1b_ref,
                      w1_ref, b1_ref, w2_ref, b2_ref, ln2g_ref, ln2b_ref,
                      muw_ref, mub_ref, out_ref, dec_s,
                      *, nh, ksz, pad, Tm, Tm_out):
    """One FFT block per grid step.  grid=(B, L): batch is 'parallel' (megacore),
    layers are 'arbitrary' with the running hidden state carried in a VMEM f32
    scratch, so only ~2 layers of weights are resident (streamed / double-buffered)
    and the next layer's weight DMA overlaps this layer's compute."""
    lyr = pl.program_id(1)

    @pl.when(lyr == 0)
    def _():
        dec_s[...] = dec_ref[...].astype(jnp.float32)

    dec = dec_s[...]                                   # (Tm, SA) f32
    dec_b = _bf16(dec)

    # ---- multi-head self-attention ----
    # Per-head weight stacks (nh, SA, dk) and a per-head folded output projection
    # (attn += o_h @ fc_w[h]) -> no lane slicing of a fused QKV activation, no lane
    # concat of head outputs, only one head's intermediates live at a time.
    # 1/sqrt(dk) is folded into Wq/bq host-side.
    attn = None
    for h in range(nh):
        q = jnp.dot(dec_b, wq_ref[h], preferred_element_type=jnp.float32) + bq_ref[h]
        k = jnp.dot(dec_b, wk_ref[h], preferred_element_type=jnp.float32) + bk_ref[h]
        v = jnp.dot(dec_b, wv_ref[h], preferred_element_type=jnp.float32) + bv_ref[h]
        s = jax.lax.dot_general(_bf16(q), _bf16(k), (((1,), (1,)), ((), ())),
                                preferred_element_type=jnp.float32)        # (Tm, Tm)
        p = jnp.exp(s - jnp.max(s, axis=-1, keepdims=True))
        inv = pl.reciprocal(jnp.sum(p, axis=-1, keepdims=True), approx=True)
        o = jnp.dot(_bf16(p), _bf16(v), preferred_element_type=jnp.float32) * inv
        term = jnp.dot(_bf16(o), fcw_ref[h], preferred_element_type=jnp.float32)
        attn = term if attn is None else attn + term
    attn = attn + fcb_ref[...]                         # dropout: eval no-op
    dec = _layer_norm(attn + dec, ln1g_ref[...], ln1b_ref[...])

    # ---- position-wise conv FFN: Conv1d -> ReLU -> Conv1d, residual + LN ----
    t_idx = jax.lax.broadcasted_iota(jnp.int32, (Tm, 1), 0)
    f = jnp.maximum(_temporal_conv(dec, w1_ref, b1_ref, t_idx, Tm, ksz, pad), 0.0)
    f = _temporal_conv(f, w2_ref, b2_ref, t_idx, Tm, ksz, pad)
    dec = _layer_norm(f + dec, ln2g_ref[...], ln2b_ref[...])

    dec_s[...] = dec

    # ---- mu/log_std 1x1 conv head on the last layer iteration only ----
    @pl.when(lyr == pl.num_programs(1) - 1)
    def _():
        head = jax.lax.dot_general(muw_ref[...], _bf16(dec), (((1,), (1,)), ((), ())),
                                   preferred_element_type=jnp.float32) + mub_ref[...]
        if Tm_out > Tm:  # pad time axis to a multiple of 128 -> lane-dense store
            head = jnp.concatenate(
                [head, jnp.zeros((head.shape[0], Tm_out - Tm), jnp.float32)], axis=1)
        out_ref[...] = head


# ----------------------------- parameters / glue -----------------------------

def get_sinusoid_encoding_table(n_position, d_hid):
    pos = np.arange(n_position)[:, None].astype(np.float64)
    i = np.arange(d_hid)[None, :]
    angle = pos / np.power(10000.0, 2.0 * (i // 2) / d_hid)
    table = np.zeros((n_position, d_hid), dtype=np.float64)
    table[:, 0::2] = np.sin(angle[:, 0::2])
    table[:, 1::2] = np.cos(angle[:, 1::2])
    return jnp.asarray(table, jnp.float32)


def init_params(key, cfg):
    keys = iter(jax.random.split(key, 64))

    def nrm(shape, scale=0.1):
        return scale * jax.random.normal(next(keys), shape, jnp.float32)

    Cin, H = cfg["in_channels"], cfg["h_channels"]
    SA, Fd = cfg["sa_hidden"], cfg["sa_filter_size"]
    Ks, Co = cfg["sa_kernel_size"], cfg["out_channels"]

    params = {
        "conv_init_w": nrm((Cin, H)),
        "conv_init_b": jnp.zeros((H,), jnp.float32),
        "conv_layers": [],
        "out_bn_g": jnp.ones((H,), jnp.float32),
        "out_bn_b": jnp.zeros((H,), jnp.float32),
        "pos_enc": get_sinusoid_encoding_table(cfg["max_seq_len"] + 1, SA),
        "fft_layers": [],
        "mu_logs_w": nrm((SA, 2 * Co)),
        "mu_logs_b": jnp.zeros((2 * Co,), jnp.float32),
    }
    for ksz in cfg["conv_kernels"]:            # paddings stay in cfg (static),
        params["conv_layers"].append({         # never inside the traced pytree.
            "w": nrm((ksz, H, H)),
            "b": jnp.zeros((H,), jnp.float32),
            "bn_g": jnp.ones((H,), jnp.float32),
            "bn_b": jnp.zeros((H,), jnp.float32),
        })
    for _ in range(cfg["sa_layer"]):
        params["fft_layers"].append({
            "wq": nrm((SA, SA)), "bq": jnp.zeros((SA,), jnp.float32),
            "wk": nrm((SA, SA)), "bk": jnp.zeros((SA,), jnp.float32),
            "wv": nrm((SA, SA)), "bv": jnp.zeros((SA,), jnp.float32),
            "fc_w": nrm((SA, SA)), "fc_b": jnp.zeros((SA,), jnp.float32),
            "ln1_g": jnp.ones((SA,), jnp.float32), "ln1_b": jnp.zeros((SA,), jnp.float32),
            "w1": nrm((Ks, SA, Fd)), "b1": jnp.zeros((Fd,), jnp.float32),
            "w2": nrm((Ks, Fd, SA)), "b2": jnp.zeros((SA,), jnp.float32),
            "ln2_g": jnp.ones((SA,), jnp.float32), "ln2_b": jnp.zeros((SA,), jnp.float32),
        })
    return params


def _layer_spec(arr):
    """BlockSpec selecting layer l's slab of a (L, ...) weight stack (layer dim squeezed)."""
    nd = arr.ndim
    return pl.BlockSpec((None,) + tuple(arr.shape[1:]),
                        lambda b, l, nd=nd: (l,) + (0,) * (nd - 1))


def _const_spec(arr):
    nd = arr.ndim
    return pl.BlockSpec(tuple(arr.shape), lambda b, l, nd=nd: (0,) * nd)


def _vmem_limit(nbytes):
    # generous headroom over the estimated footprint, clamped to 64 MiB so it is
    # safe across v5e/v6e (128 MiB physical) and v7x (64 MiB physical).
    return int(min(64 << 20, max(32 << 20, 2 * int(nbytes))))


def tv_conv_sabn_encoder_forward(params, cfg, x_bct, lens=None):
    # TODO(synk): lens != None masked path (sequence_mask + attention mask) not implemented.
    assert lens is None
    B, Cin, T = x_bct.shape
    H, SA = cfg["h_channels"], cfg["sa_hidden"]
    assert H == SA, "sa_input feeds the FFT stack directly, so h_channels must equal sa_hidden"
    nh = cfg["sa_head"]
    dk = SA // nh
    Co = cfg["out_channels"]
    Fd = cfg["sa_filter_size"]
    Ks = cfg["sa_kernel_size"]
    L = cfg["sa_layer"]
    # TODO(synk): eval branch for T > max_seq_len (fresh full-length pos enc) not implemented.
    Tm = min(T, cfg["max_seq_len"])
    Tm_out = ((Tm + 127) // 128) * 128          # lane-dense (unmasked) output stores

    # -------- kernel 1: conv / batch-norm prenet (single program, whole batch) --------
    k1_inputs = [x_bct.astype(jnp.float32),
                 _bf16(params["conv_init_w"]),
                 params["conv_init_b"].reshape(1, H)]
    for lyr in params["conv_layers"]:
        k1_inputs += [_bf16(lyr["w"]),                      # (ksz, H, H)
                      lyr["b"].reshape(1, H),
                      lyr["bn_g"].reshape(1, H),
                      lyr["bn_b"].reshape(1, H)]
    k1_inputs += [params["out_bn_g"].reshape(1, H),
                  params["out_bn_b"].reshape(1, H),
                  params["pos_enc"][:Tm, :]]

    conv_k_flops = sum(int(k) * H * H for k in cfg["conv_kernels"])
    k1_flops = 2 * B * T * (Cin * H + conv_k_flops)
    k1_bytes = 4 * B * Cin * T + 2 * B * Tm * SA + 4 * Tm * SA + 2 * conv_k_flops + 2 * Cin * H
    k1_vmem = 8 * (4 * B * T * H) + k1_bytes    # a few live (B*T, H) f32 copies + params

    dec0 = pl.pallas_call(
        functools.partial(_prenet_kernel,
                          conv_kernel_sizes=tuple(cfg["conv_kernels"]),
                          conv_paddings=tuple(cfg["paddings"]),
                          B=B, T=T, Tm=Tm),
        out_shape=jax.ShapeDtypeStruct((B, Tm, SA), jnp.bfloat16),
        compiler_params=pltpu.CompilerParams(vmem_limit_bytes=_vmem_limit(k1_vmem)),
        cost_estimate=pl.CostEstimate(flops=int(k1_flops),
                                      transcendentals=int(8 * H),
                                      bytes_accessed=int(k1_bytes)),
    )(*k1_inputs)

    # -------- kernel 2: FFT-block stack + mu/log_std head --------
    # Per-layer weights stacked with a leading layer dim so they can be streamed over
    # the "arbitrary" layer grid axis (only ~2 layers resident / double-buffered).
    scale = 1.0 / math.sqrt(dk)

    def stk(name):
        return jnp.stack([lyr[name] for lyr in params["fft_layers"]])

    def out_heads(w):          # (L, SA, SA) -> (L, nh, SA, dk): head-major output cols
        return jnp.transpose(w.reshape(L, SA, nh, dk), (0, 2, 1, 3))

    wq_h = _bf16(out_heads(stk("wq") * scale))
    wk_h = _bf16(out_heads(stk("wk")))
    wv_h = _bf16(out_heads(stk("wv")))
    bq_h = (stk("bq") * scale).reshape(L, nh, 1, dk)
    bk_h = stk("bk").reshape(L, nh, 1, dk)
    bv_h = stk("bv").reshape(L, nh, 1, dk)
    fcw_h = _bf16(stk("fc_w").reshape(L, nh, dk, SA))       # rows ordered head-major
    fcb = stk("fc_b").reshape(L, 1, SA)
    ln1g = stk("ln1_g").reshape(L, 1, SA)
    ln1b = stk("ln1_b").reshape(L, 1, SA)
    w1 = _bf16(stk("w1"))                                    # (L, Ks, SA, Fd)
    b1 = stk("b1").reshape(L, 1, Fd)
    w2 = _bf16(stk("w2"))                                    # (L, Ks, Fd, SA)
    b2 = stk("b2").reshape(L, 1, SA)
    ln2g = stk("ln2_g").reshape(L, 1, SA)
    ln2b = stk("ln2_b").reshape(L, 1, SA)
    muw = _bf16(params["mu_logs_w"].T)                       # (2*Co, SA), pre-transposed
    mub = params["mu_logs_b"].reshape(2 * Co, 1)

    layer_arrays = [wq_h, wk_h, wv_h, bq_h, bk_h, bv_h, fcw_h, fcb, ln1g, ln1b,
                    w1, b1, w2, b2, ln2g, ln2b]
    k2_inputs = [dec0] + layer_arrays + [muw, mub]

    in_specs = [pl.BlockSpec((None, Tm, SA), lambda b, l: (b, 0, 0))]
    in_specs += [_layer_spec(a) for a in layer_arrays]
    in_specs += [_const_spec(muw), _const_spec(mub)]

    per_layer_w_bytes = sum(int(np.prod(a.shape[1:])) * a.dtype.itemsize
                            for a in layer_arrays)
    k2_vmem = (2 * per_layer_w_bytes            # double-buffered layer weights
               + 2 * Tm * SA + 4 * Tm * SA      # dec0 block + dec scratch
               + 2 * 4 * (2 * Co) * Tm_out      # output block (double-buffered)
               + 2 * SA * (2 * Co) + 4 * (2 * Co)
               + 4 * (2 * Tm * Tm + Tm * Fd + 6 * Tm * SA))   # live intermediates
    k2_flops = (B * L * (2 * Tm * SA * 3 * SA + 4 * Tm * Tm * SA + 2 * Tm * SA * SA
                         + 4 * Ks * Tm * SA * Fd)
                + B * 2 * Tm * SA * 2 * Co)
    k2_trans = B * L * nh * Tm * Tm
    k2_bytes = B * 2 * Tm * SA + B * L * per_layer_w_bytes + B * 4 * (2 * Co) * Tm_out

    # NOTE: on single-TC chips (v5e/v6e) with very small B/Tm, blocking several batch
    # elements per grid step would cut per-step overhead; not done here.
    mu_logs = pl.pallas_call(
        functools.partial(_fft_stack_kernel, nh=nh, ksz=Ks, pad=(Ks - 1) // 2,
                          Tm=Tm, Tm_out=Tm_out),
        out_shape=jax.ShapeDtypeStruct((B, 2 * Co, Tm_out), jnp.float32),
        grid=(B, L),
        in_specs=in_specs,
        out_specs=pl.BlockSpec((None, 2 * Co, Tm_out), lambda b, l: (b, 0, 0)),
        scratch_shapes=[pltpu.VMEM((Tm, SA), jnp.float32)],
        compiler_params=pltpu.CompilerParams(
            dimension_semantics=("parallel", "arbitrary"),
            vmem_limit_bytes=_vmem_limit(k2_vmem)),
        cost_estimate=pl.CostEstimate(flops=int(k2_flops),
                                      transcendentals=int(k2_trans),
                                      bytes_accessed=int(k2_bytes)),
    )(*k2_inputs)

    mu = mu_logs[:, :Co, :Tm]
    log_std = mu_logs[:, Co:, :Tm]
    return mu, log_std


# ----------------------------- main -----------------------------

if __name__ == "__main__":
    cfg = dict(
        in_channels=4, h_channels=32,
        conv_kernels=(3, 3), paddings=(1, 1),
        sa_hidden=32, sa_layer=2, sa_head=2,
        sa_filter_size=64, sa_kernel_size=3, sa_dropout=0.1,
        out_channels=4, max_seq_len=32,
    )
    key = jax.random.PRNGKey(0)
    pkey, xkey = jax.random.split(key)
    params = init_params(pkey, cfg)

    B, T = 2, 16
    x = jax.random.normal(xkey, (B, cfg["in_channels"], T), jnp.float32)

    fwd = jax.jit(lambda p, xx: tv_conv_sabn_encoder_forward(p, cfg, xx))
    mu, log_std = fwd(params, x)
    jax.block_until_ready(mu)
    jax.block_until_ready(log_std)

    assert mu.shape == (B, cfg["out_channels"], T), mu.shape
    assert log_std.shape == (B, cfg["out_channels"], T), log_std.shape
    assert bool(jnp.all(jnp.isfinite(mu))) and bool(jnp.all(jnp.isfinite(log_std)))
    print("KERNEL_OK")
</pallas_src>

<mosaic_0001>
module attributes {stable_mosaic.version = 11 : i64} {
  func.func @_prenet_kernel(%arg0: memref<2x4x16xf32, #tpu.memory_space<vmem>>, %arg1: memref<4x32xbf16, #tpu.memory_space<vmem>>, %arg2: memref<1x32xf32, #tpu.memory_space<vmem>>, %arg3: memref<3x32x32xbf16, #tpu.memory_space<vmem>>, %arg4: memref<1x32xf32, #tpu.memory_space<vmem>>, %arg5: memref<1x32xf32, #tpu.memory_space<vmem>>, %arg6: memref<1x32xf32, #tpu.memory_space<vmem>>, %arg7: memref<3x32x32xbf16, #tpu.memory_space<vmem>>, %arg8: memref<1x32xf32, #tpu.memory_space<vmem>>, %arg9: memref<1x32xf32, #tpu.memory_space<vmem>>, %arg10: memref<1x32xf32, #tpu.memory_space<vmem>>, %arg11: memref<1x32xf32, #tpu.memory_space<vmem>>, %arg12: memref<1x32xf32, #tpu.memory_space<vmem>>, %arg13: memref<16x32xf32, #tpu.memory_space<vmem>>, %arg14: memref<2x16x32xbf16, #tpu.memory_space<vmem>>) attributes {dimension_semantics = [], scalar_prefetch = 0 : i64, scratch_operands = 0 : i64, tpu.core_type = #tpu.core_type<tc>} {
    %c0 = arith.constant 0 : index
    %c0_0 = arith.constant 0 : index
    %0 = vector.load %arg1[%c0, %c0_0] : memref<4x32xbf16, #tpu.memory_space<vmem>>, vector<4x32xbf16>
    %c0_1 = arith.constant 0 : index
    %c0_2 = arith.constant 0 : index
    %c0_3 = arith.constant 0 : index
    %1 = vector.load %arg0[%c0_1, %c0_2, %c0_3] : memref<2x4x16xf32, #tpu.memory_space<vmem>>, vector<1x4x16xf32>
    %2 = vector.shape_cast %1 : vector<1x4x16xf32> to vector<4x16xf32>
    %3 = arith.truncf %2 : vector<4x16xf32> to vector<4x16xbf16>
    %cst = arith.constant dense<0.000000e+00> : vector<16x32xf32>
    %4 = tpu.matmul %3, %0, %cst {dimension_numbers = #tpu.dot_dimension_numbers<[0], [0], [1], [1], [0, 1, 1, 1], [], []>} : vector<4x16xbf16>, vector<4x32xbf16>, vector<16x32xf32> -> vector<16x32xf32>
    %c1 = arith.constant 1 : index
    %c0_4 = arith.constant 0 : index
    %c0_5 = arith.constant 0 : index
    %5 = vector.load %arg0[%c1, %c0_4, %c0_5] : memref<2x4x16xf32, #tpu.memory_space<vmem>>, vector<1x4x16xf32>
    %6 = vector.shape_cast %5 : vector<1x4x16xf32> to vector<4x16xf32>
    %7 = arith.truncf %6 : vector<4x16xf32> to vector<4x16xbf16>
    %cst_6 = arith.constant dense<0.000000e+00> : vector<16x32xf32>
    %8 = tpu.matmul %7, %0, %cst_6 {dimension_numbers = #tpu.dot_dimension_numbers<[0], [0], [1], [1], [0, 1, 1, 1], [], []>} : vector<4x16xbf16>, vector<4x32xbf16>, vector<16x32xf32> -> vector<16x32xf32>
    %9 = tpu.concatenate %4, %8 in 0 : vector<16x32xf32>, vector<16x32xf32> -> vector<32x32xf32>
    %c0_7 = arith.constant 0 : index
    %c0_8 = arith.constant 0 : index
    %10 = vector.load %arg2[%c0_7, %c0_8] : memref<1x32xf32, #tpu.memory_space<vmem>>, vector<1x32xf32>
    %11 = vector.broadcast %10 : vector<1x32xf32> to vector<32x32xf32>
    %12 = arith.addf %9, %11 : vector<32x32xf32>
    %13 = tpu.iota {dimensions = array<i32: 0>} : vector<32x1xi32>
    %c16_i32 = arith.constant 16 : i32
    %c0_i32 = arith.constant 0 : i32
    %14 = arith.cmpi eq, %c16_i32, %c0_i32 : i32
    %c1_i32 = arith.constant 1 : i32
    %15 = arith.select %14, %c1_i32, %c16_i32 : i32
    %16 = vector.broadcast %15 : i32 to vector<32x1xi32>
    %17 = arith.remsi %13, %16 : vector<32x1xi32>
    %c0_i32_9 = arith.constant 0 : i32
    %18 = vector.broadcast %c0_i32_9 : i32 to vector<32x1xi32>
    %19 = arith.cmpi ne, %17, %18 : vector<32x1xi32>
    %c0_i32_10 = arith.constant 0 : i32
    %20 = vector.broadcast %c0_i32_10 : i32 to vector<32x1xi32>
    %21 = arith.cmpi slt, %17, %20 : vector<32x1xi32>
    %c0_i32_11 = arith.constant 0 : i32
    %22 = arith.cmpi slt, %15, %c0_i32_11 : i32
    %23 = vector.broadcast %22 : i1 to vector<32x1xi1>
    %24 = vector.broadcast %23 : vector<32x1xi1> to vector<32x1xi1>
    %25 = arith.xori %21, %24 : vector<32x1xi1>
    %26 = arith.andi %25, %19 : vector<32x1xi1>
    %27 = vector.broadcast %15 : i32 to vector<32x1xi32>
    %28 = arith.addi %17, %27 : vector<32x1xi32>
    %29 = arith.select %26, %28, %17 : vector<32x1xi1>, vector<32x1xi32>
    %c1_i32_12 = arith.constant 1 : i32
    %30 = tpu.dynamic_rotate %12 by %c1_i32_12 dim 0 : vector<32x32xf32>, i32 -> vector<32x32xf32>
    %c-1_i32 = arith.constant -1 : i32
    %31 = vector.broadcast %c-1_i32 : i32 to vector<32x1xi32>
    %32 = arith.addi %29, %31 : vector<32x1xi32>
    %c0_i32_13 = arith.constant 0 : i32
    %33 = vector.broadcast %c0_i32_13 : i32 to vector<32x1xi32>
    %34 = arith.cmpi sge, %32, %33 : vector<32x1xi32>
    %c16_i32_14 = arith.constant 16 : i32
    %35 = vector.broadcast %c16_i32_14 : i32 to vector<32x1xi32>
    %36 = arith.cmpi slt, %32, %35 : vector<32x1xi32>
    %37 = arith.andi %34, %36 : vector<32x1xi1>
    %cst_15 = arith.constant 0.000000e+00 : f32
    %38 = vector.shape_cast %37 : vector<32x1xi1> to vector<32x1xi1>
    %39 = vector.broadcast %38 : vector<32x1xi1> to vector<32x32xi1>
    %40 = vector.broadcast %cst_15 : f32 to vector<32x32xf32>
    %41 = arith.select %39, %30, %40 : vector<32x32xi1>, vector<32x32xf32>
    %42 = arith.truncf %41 : vector<32x32xf32> to vector<32x32xbf16>
    %c0_16 = arith.constant 0 : index
    %c0_17 = arith.constant 0 : index
    %c0_18 = arith.constant 0 : index
    %43 = vector.load %arg3[%c0_16, %c0_17, %c0_18] : memref<3x32x32xbf16, #tpu.memory_space<vmem>>, vector<1x32x32xbf16>
    %44 = vector.shape_cast %43 : vector<1x32x32xbf16> to vector<32x32xbf16>
    %cst_19 = arith.constant dense<0.000000e+00> : vector<32x32xf32>
    %45 = tpu.matmul %42, %44, %cst_19 {dimension_numbers = #tpu.dot_dimension_numbers<[1], [0], [0], [1], [0, 0, 1, 1], [], []>} : vector<32x32xbf16>, vector<32x32xbf16>, vector<32x32xf32> -> vector<32x32xf32>
    %46 = arith.truncf %12 : vector<32x32xf32> to vector<32x32xbf16>
    %c1_20 = arith.constant 1 : index
    %c0_21 = arith.constant 0 : index
    %c0_22 = arith.constant 0 : index
    %47 = vector.load %arg3[%c1_20, %c0_21, %c0_22] : memref<3x32x32xbf16, #tpu.memory_space<vmem>>, vector<1x32x32xbf16>
    %48 = vector.shape_cast %47 : vector<1x32x32xbf16> to vector<32x32xbf16>
    %cst_23 = arith.constant dense<0.000000e+00> : vector<32x32xf32>
    %49 = tpu.matmul %46, %48, %cst_23 {dimension_numbers = #tpu.dot_dimension_numbers<[1], [0], [0], [1], [0, 0, 1, 1], [], []>} : vector<32x32xbf16>, vector<32x32xbf16>, vector<32x32xf32> -> vector<32x32xf32>
    %50 = arith.addf %45, %49 : vector<32x32xf32>
    %c31_i32 = arith.constant 31 : i32
    %51 = tpu.dynamic_rotate %12 by %c31_i32 dim 0 : vector<32x32xf32>, i32 -> vector<32x32xf32>
    %c1_i32_24 = arith.constant 1 : i32
    %52 = vector.broadcast %c1_i32_24 : i32 to vector<32x1xi32>
    %53 = arith.addi %29, %52 : vector<32x1xi32>
    %c0_i32_25 = arith.constant 0 : i32
    %54 = vector.broadcast %c0_i32_25 : i32 to vector<32x1xi32>
    %55 = arith.cmpi sge, %53, %54 : vector<32x1xi32>
    %c16_i32_26 = arith.constant 16 : i32
    %56 = vector.broadcast %c16_i32_26 : i32 to vector<32x1xi32>
    %57 = arith.cmpi slt, %53, %56 : vector<32x1xi32>
    %58 = arith.andi %55, %57 : vector<32x1xi1>
    %cst_27 = arith.constant 0.000000e+00 : f32
    %59 = vector.shape_cast %58 : vector<32x1xi1> to vector<32x1xi1>
    %60 = vector.broadcast %59 : vector<32x1xi1> to vector<32x32xi1>
    %61 = vector.broadcast %cst_27 : f32 to vector<32x32xf32>
    %62 = arith.select %60, %51, %61 : vector<32x32xi1>, vector<32x32xf32>
    %63 = arith.truncf %62 : vector<32x32xf32> to vector<32x32xbf16>
    %c2 = arith.constant 2 : index
    %c0_28 = arith.constant 0 : index
    %c0_29 = arith.constant 0 : index
    %64 = vector.load %arg3[%c2, %c0_28, %c0_29] : memref<3x32x32xbf16, #tpu.memory_space<vmem>>, vector<1x32x32xbf16>
    %65 = vector.shape_cast %64 : vector<1x32x32xbf16> to vector<32x32xbf16>
    %cst_30 = arith.constant dense<0.000000e+00> : vector<32x32xf32>
    %66 = tpu.matmul %63, %65, %cst_30 {dimension_numbers = #tpu.dot_dimension_numbers<[1], [0], [0], [1], [0, 0, 1, 1], [], []>} : vector<32x32xbf16>, vector<32x32xbf16>, vector<32x32xf32> -> vector<32x32xf32>
    %67 = arith.addf %50, %66 : vector<32x32xf32>
    %c0_31 = arith.constant 0 : index
    %c0_32 = arith.constant 0 : index
    %68 = vector.load %arg4[%c0_31, %c0_32] : memref<1x32xf32, #tpu.memory_space<vmem>>, vector<1x32xf32>
    %69 = vector.broadcast %68 : vector<1x32xf32> to vector<32x32xf32>
    %70 = arith.addf %67, %69 : vector<32x32xf32>
    %c0_33 = arith.constant 0 : index
    %c0_34 = arith.constant 0 : index
    %71 = vector.load %arg5[%c0_33, %c0_34] : memref<1x32xf32, #tpu.memory_space<vmem>>, vector<1x32xf32>
    %c0_35 = arith.constant 0 : index
    %c0_36 = arith.constant 0 : index
    %72 = vector.load %arg6[%c0_35, %c0_36] : memref<1x32xf32, #tpu.memory_space<vmem>>, vector<1x32xf32>
    %cst_37 = arith.constant dense<0.000000e+00> : vector<32xf32>
    %73 = vector.multi_reduction <add>, %70, %cst_37 [0] : vector<32x32xf32> to vector<32xf32>
    %74 = vector.shape_cast %73 : vector<32xf32> to vector<1x32xf32>
    %75 = arith.mulf %70, %70 : vector<32x32xf32>
    %cst_38 = arith.constant dense<0.000000e+00> : vector<32xf32>
    %76 = vector.multi_reduction <add>, %75, %cst_38 [0] : vector<32x32xf32> to vector<32xf32>
    %77 = vector.shape_cast %76 : vector<32xf32> to vector<1x32xf32>
    %cst_39 = arith.constant 3.125000e-02 : f32
    %78 = vector.broadcast %cst_39 : f32 to vector<1x32xf32>
    %79 = arith.mulf %74, %78 : vector<1x32xf32>
    %cst_40 = arith.constant 3.125000e-02 : f32
    %80 = vector.broadcast %cst_40 : f32 to vector<1x32xf32>
    %81 = arith.mulf %77, %80 : vector<1x32xf32>
    %82 = arith.mulf %79, %79 : vector<1x32xf32>
    %83 = arith.subf %81, %82 : vector<1x32xf32>
    %cst_41 = arith.constant 0.000000e+00 : f32
    %84 = vector.broadcast %cst_41 : f32 to vector<1x32xf32>
    %85 = arith.maximumf %83, %84 : vector<1x32xf32>
    %86 = vector.broadcast %79 : vector<1x32xf32> to vector<32x32xf32>
    %87 = arith.subf %70, %86 : vector<32x32xf32>
    %cst_42 = arith.constant 9.99999974E-6 : f32
    %88 = vector.broadcast %cst_42 : f32 to vector<1x32xf32>
    %89 = arith.addf %85, %88 : vector<1x32xf32>
    %90 = math.rsqrt %89 : vector<1x32xf32>
    %91 = vector.broadcast %90 : vector<1x32xf32> to vector<32x32xf32>
    %92 = arith.mulf %87, %91 : vector<32x32xf32>
    %93 = vector.broadcast %71 : vector<1x32xf32> to vector<32x32xf32>
    %94 = arith.mulf %92, %93 : vector<32x32xf32>
    %95 = vector.broadcast %72 : vector<1x32xf32> to vector<32x32xf32>
    %96 = arith.addf %94, %95 : vector<32x32xf32>
    %cst_43 = arith.constant 0.000000e+00 : f32
    %97 = vector.broadcast %cst_43 : f32 to vector<32x32xf32>
    %98 = arith.maximumf %96, %97 : vector<32x32xf32>
    %c1_i32_44 = arith.constant 1 : i32
    %99 = tpu.dynamic_rotate %98 by %c1_i32_44 dim 0 : vector<32x32xf32>, i32 -> vector<32x32xf32>
    %c-1_i32_45 = arith.constant -1 : i32
    %100 = vector.broadcast %c-1_i32_45 : i32 to vector<32x1xi32>
    %101 = arith.addi %29, %100 : vector<32x1xi32>
    %c0_i32_46 = arith.constant 0 : i32
    %102 = vector.broadcast %c0_i32_46 : i32 to vector<32x1xi32>
    %103 = arith.cmpi sge, %101, %102 : vector<32x1xi32>
    %c16_i32_47 = arith.constant 16 : i32
    %104 = vector.broadcast %c16_i32_47 : i32 to vector<32x1xi32>
    %105 = arith.cmpi slt, %101, %104 : vector<32x1xi32>
    %106 = arith.andi %103, %105 : vector<32x1xi1>
    %cst_48 = arith.constant 0.000000e+00 : f32
    %107 = vector.shape_cast %106 : vector<32x1xi1> to vector<32x1xi1>
    %108 = vector.broadcast %107 : vector<32x1xi1> to vector<32x32xi1>
    %109 = vector.broadcast %cst_48 : f32 to vector<32x32xf32>
    %110 = arith.select %108, %99, %109 : vector<32x32xi1>, vector<32x32xf32>
    %111 = arith.truncf %110 : vector<32x32xf32> to vector<32x32xbf16>
    %c0_49 = arith.constant 0 : index
    %c0_50 = arith.constant 0 : index
    %c0_51 = arith.constant 0 : index
    %112 = vector.load %arg7[%c0_49, %c0_50, %c0_51] : memref<3x32x32xbf16, #tpu.memory_space<vmem>>, vector<1x32x32xbf16>
    %113 = vector.shape_cast %112 : vector<1x32x32xbf16> to vector<32x32xbf16>
    %cst_52 = arith.constant dense<0.000000e+00> : vector<32x32xf32>
    %114 = tpu.matmul %111, %113, %cst_52 {dimension_numbers = #tpu.dot_dimension_numbers<[1], [0], [0], [1], [0, 0, 1, 1], [], []>} : vector<32x32xbf16>, vector<32x32xbf16>, vector<32x32xf32> -> vector<32x32xf32>
    %115 = arith.truncf %98 : vector<32x32xf32> to vector<32x32xbf16>
    %c1_53 = arith.constant 1 : index
    %c0_54 = arith.constant 0 : index
    %c0_55 = arith.constant 0 : index
    %116 = vector.load %arg7[%c1_53, %c0_54, %c0_55] : memref<3x32x32xbf16, #tpu.memory_space<vmem>>, vector<1x32x32xbf16>
    %117 = vector.shape_cast %116 : vector<1x32x32xbf16> to vector<32x32xbf16>
    %cst_56 = arith.constant dense<0.000000e+00> : vector<32x32xf32>
    %118 = tpu.matmul %115, %117, %cst_56 {dimension_numbers = #tpu.dot_dimension_numbers<[1], [0], [0], [1], [0, 0, 1, 1], [], []>} : vector<32x32xbf16>, vector<32x32xbf16>, vector<32x32xf32> -> vector<32x32xf32>
    %119 = arith.addf %114, %118 : vector<32x32xf32>
    %c31_i32_57 = arith.constant 31 : i32
    %120 = tpu.dynamic_rotate %98 by %c31_i32_57 dim 0 : vector<32x32xf32>, i32 -> vector<32x32xf32>
    %c1_i32_58 = arith.constant 1 : i32
    %121 = vector.broadcast %c1_i32_58 : i32 to vector<32x1xi32>
    %122 = arith.addi %29, %121 : vector<32x1xi32>
    %c0_i32_59 = arith.constant 0 : i32
    %123 = vector.broadcast %c0_i32_59 : i32 to vector<32x1xi32>
    %124 = arith.cmpi sge, %122, %123 : vector<32x1xi32>
    %c16_i32_60 = arith.constant 16 : i32
    %125 = vector.broadcast %c16_i32_60 : i32 to vector<32x1xi32>
    %126 = arith.cmpi slt, %122, %125 : vector<32x1xi32>
    %127 = arith.andi %124, %126 : vector<32x1xi1>
    %cst_61 = arith.constant 0.000000e+00 : f32
    %128 = vector.shape_cast %127 : vector<32x1xi1> to vector<32x1xi1>
    %129 = vector.broadcast %128 : vector<32x1xi1> to vector<32x32xi1>
    %130 = vector.broadcast %cst_61 : f32 to vector<32x32xf32>
    %131 = arith.select %129, %120, %130 : vector<32x32xi1>, vector<32x32xf32>
    %132 = arith.truncf %131 : vector<32x32xf32> to vector<32x32xbf16>
    %c2_62 = arith.constant 2 : index
    %c0_63 = arith.constant 0 : index
    %c0_64 = arith.constant 0 : index
    %133 = vector.load %arg7[%c2_62, %c0_63, %c0_64] : memref<3x32x32xbf16, #tpu.memory_space<vmem>>, vector<1x32x32xbf16>
    %134 = vector.shape_cast %133 : vector<1x32x32xbf16> to vector<32x32xbf16>
    %cst_65 = arith.constant dense<0.000000e+00> : vector<32x32xf32>
    %135 = tpu.matmul %132, %134, %cst_65 {dimension_numbers = #tpu.dot_dimension_numbers<[1], [0], [0], [1], [0, 0, 1, 1], [], []>} : vector<32x32xbf16>, vector<32x32xbf16>, vector<32x32xf32> -> vector<32x32xf32>
    %136 = arith.addf %119, %135 : vector<32x32xf32>
    %c0_66 = arith.constant 0 : index
    %c0_67 = arith.constant 0 : index
    %137 = vector.load %arg8[%c0_66, %c0_67] : memref<1x32xf32, #tpu.memory_space<vmem>>, vector<1x32xf32>
    %138 = vector.broadcast %137 : vector<1x32xf32> to vector<32x32xf32>
    %139 = arith.addf %136, %138 : vector<32x32xf32>
    %c0_68 = arith.constant 0 : index
    %c0_69 = arith.constant 0 : index
    %140 = vector.load %arg9[%c0_68, %c0_69] : memref<1x32xf32, #tpu.memory_space<vmem>>, vector<1x32xf32>
    %c0_70 = arith.constant 0 : index
    %c0_71 = arith.constant 0 : index
    %141 = vector.load %arg10[%c0_70, %c0_71] : memref<1x32xf32, #tpu.memory_space<vmem>>, vector<1x32xf32>
    %cst_72 = arith.constant dense<0.000000e+00> : vector<32xf32>
    %142 = vector.multi_reduction <add>, %139, %cst_72 [0] : vector<32x32xf32> to vector<32xf32>
    %143 = vector.shape_cast %142 : vector<32xf32> to vector<1x32xf32>
    %144 = arith.mulf %139, %139 : vector<32x32xf32>
    %cst_73 = arith.constant dense<0.000000e+00> : vector<32xf32>
    %145 = vector.multi_reduction <add>, %144, %cst_73 [0] : vector<32x32xf32> to vector<32xf32>
    %146 = vector.shape_cast %145 : vector<32xf32> to vector<1x32xf32>
    %cst_74 = arith.constant 3.125000e-02 : f32
    %147 = vector.broadcast %cst_74 : f32 to vector<1x32xf32>
    %148 = arith.mulf %143, %147 : vector<1x32xf32>
    %cst_75 = arith.constant 3.125000e-02 : f32
    %149 = vector.broadcast %cst_75 : f32 to vector<1x32xf32>
    %150 = arith.mulf %146, %149 : vector<1x32xf32>
    %151 = arith.mulf %148, %148 : vector<1x32xf32>
    %152 = arith.subf %150, %151 : vector<1x32xf32>
    %cst_76 = arith.constant 0.000000e+00 : f32
    %153 = vector.broadcast %cst_76 : f32 to vector<1x32xf32>
    %154 = arith.maximumf %152, %153 : vector<1x32xf32>
    %155 = vector.broadcast %148 : vector<1x32xf32> to vector<32x32xf32>
    %156 = arith.subf %139, %155 : vector<32x32xf32>
    %cst_77 = arith.constant 9.99999974E-6 : f32
    %157 = vector.broadcast %cst_77 : f32 to vector<1x32xf32>
    %158 = arith.addf %154, %157 : vector<1x32xf32>
    %159 = math.rsqrt %158 : vector<1x32xf32>
    %160 = vector.broadcast %159 : vector<1x32xf32> to vector<32x32xf32>
    %161 = arith.mulf %156, %160 : vector<32x32xf32>
    %162 = vector.broadcast %140 : vector<1x32xf32> to vector<32x32xf32>
    %163 = arith.mulf %161, %162 : vector<32x32xf32>
    %164 = vector.broadcast %141 : vector<1x32xf32> to vector<32x32xf32>
    %165 = arith.addf %163, %164 : vector<32x32xf32>
    %cst_78 = arith.constant 0.000000e+00 : f32
    %166 = vector.broadcast %cst_78 : f32 to vector<32x32xf32>
    %167 = arith.maximumf %165, %166 : vector<32x32xf32>
    %cst_79 = arith.constant 0.000000e+00 : f32
    %168 = vector.broadcast %cst_79 : f32 to vector<32x32xf32>
    %169 = arith.maximumf %167, %168 : vector<32x32xf32>
    %c0_80 = arith.constant 0 : index
    %c0_81 = arith.constant 0 : index
    %170 = vector.load %arg11[%c0_80, %c0_81] : memref<1x32xf32, #tpu.memory_space<vmem>>, vector<1x32xf32>
    %c0_82 = arith.constant 0 : index
    %c0_83 = arith.constant 0 : index
    %171 = vector.load %arg12[%c0_82, %c0_83] : memref<1x32xf32, #tpu.memory_space<vmem>>, vector<1x32xf32>
    %cst_84 = arith.constant dense<0.000000e+00> : vector<32xf32>
    %172 = vector.multi_reduction <add>, %169, %cst_84 [0] : vector<32x32xf32> to vector<32xf32>
    %173 = vector.shape_cast %172 : vector<32xf32> to vector<1x32xf32>
    %174 = arith.mulf %169, %169 : vector<32x32xf32>
    %cst_85 = arith.constant dense<0.000000e+00> : vector<32xf32>
    %175 = vector.multi_reduction <add>, %174, %cst_85 [0] : vector<32x32xf32> to vector<32xf32>
    %176 = vector.shape_cast %175 : vector<32xf32> to vector<1x32xf32>
    %cst_86 = arith.constant 3.125000e-02 : f32
    %177 = vector.broadcast %cst_86 : f32 to vector<1x32xf32>
    %178 = arith.mulf %173, %177 : vector<1x32xf32>
    %cst_87 = arith.constant 3.125000e-02 : f32
    %179 = vector.broadcast %cst_87 : f32 to vector<1x32xf32>
    %180 = arith.mulf %176, %179 : vector<1x32xf32>
    %181 = arith.mulf %178, %178 : vector<1x32xf32>
    %182 = arith.subf %180, %181 : vector<1x32xf32>
    %cst_88 = arith.constant 0.000000e+00 : f32
    %183 = vector.broadcast %cst_88 : f32 to vector<1x32xf32>
    %184 = arith.maximumf %182, %183 : vector<1x32xf32>
    %185 = vector.broadcast %178 : vector<1x32xf32> to vector<32x32xf32>
    %186 = arith.subf %169, %185 : vector<32x32xf32>
    %cst_89 = arith.constant 9.99999974E-6 : f32
    %187 = vector.broadcast %cst_89 : f32 to vector<1x32xf32>
    %188 = arith.addf %184, %187 : vector<1x32xf32>
    %189 = math.rsqrt %188 : vector<1x32xf32>
    %190 = vector.broadcast %189 : vector<1x32xf32> to vector<32x32xf32>
    %191 = arith.mulf %186, %190 : vector<32x32xf32>
    %192 = vector.broadcast %170 : vector<1x32xf32> to vector<32x32xf32>
    %193 = arith.mulf %191, %192 : vector<32x32xf32>
    %194 = vector.broadcast %171 : vector<1x32xf32> to vector<32x32xf32>
    %195 = arith.addf %193, %194 : vector<32x32xf32>
    %c0_90 = arith.constant 0 : index
    %c0_91 = arith.constant 0 : index
    %196 = vector.load %arg13[%c0_90, %c0_91] : memref<16x32xf32, #tpu.memory_space<vmem>>, vector<16x32xf32>
    %197 = vector.extract_strided_slice %195 {offsets = [0, 0], sizes = [16, 32], strides = [1, 1]} : vector<32x32xf32> to vector<16x32xf32>
    %198 = arith.addf %197, %196 : vector<16x32xf32>
    %199 = arith.truncf %198 : vector<16x32xf32> to vector<16x32xbf16>
    %c0_92 = arith.constant 0 : index
    %c0_93 = arith.constant 0 : index
    %c0_94 = arith.constant 0 : index
    %200 = vector.load %arg14[%c0_92, %c0_93, %c0_94] : memref<2x16x32xbf16, #tpu.memory_space<vmem>>, vector<1x16x32xbf16>
    %201 = vector.shape_cast %200 : vector<1x16x32xbf16> to vector<16x32xbf16>
    %202 = vector.shape_cast %199 : vector<16x32xbf16> to vector<1x16x32xbf16>
    tpu.vector_store %arg14[%c0_92, %c0_93, %c0_94], %202 {strides = array<i32>} : memref<2x16x32xbf16, #tpu.memory_space<vmem>>, vector<1x16x32xbf16>,
    %203 = vector.extract_strided_slice %195 {offsets = [16, 0], sizes = [16, 32], strides = [1, 1]} : vector<32x32xf32> to vector<16x32xf32>
    %204 = arith.addf %203, %196 : vector<16x32xf32>
    %205 = arith.truncf %204 : vector<16x32xf32> to vector<16x32xbf16>
    %c1_95 = arith.constant 1 : index
    %c0_96 = arith.constant 0 : index
    %c0_97 = arith.constant 0 : index
    %206 = vector.load %arg14[%c1_95, %c0_96, %c0_97] : memref<2x16x32xbf16, #tpu.memory_space<vmem>>, vector<1x16x32xbf16>
    %207 = vector.shape_cast %206 : vector<1x16x32xbf16> to vector<16x32xbf16>
    %208 = vector.shape_cast %205 : vector<16x32xbf16> to vector<1x16x32xbf16>
    tpu.vector_store %arg14[%c1_95, %c0_96, %c0_97], %208 {strides = array<i32>} : memref<2x16x32xbf16, #tpu.memory_space<vmem>>, vector<1x16x32xbf16>,
    return
  }
}

module attributes {stable_mosaic.version = 11 : i64} {
  func.func @_fft_stack_kernel(%arg0: i32, %arg1: i32, %arg2: memref<1x16x32xbf16, #tpu.memory_space<vmem>>, %arg3: memref<1x2x32x16xbf16, #tpu.memory_space<vmem>>, %arg4: memref<1x2x32x16xbf16, #tpu.memory_space<vmem>>, %arg5: memref<1x2x32x16xbf16, #tpu.memory_space<vmem>>, %arg6: memref<1x2x1x16xf32, #tpu.memory_space<vmem>>, %arg7: memref<1x2x1x16xf32, #tpu.memory_space<vmem>>, %arg8: memref<1x2x1x16xf32, #tpu.memory_space<vmem>>, %arg9: memref<1x2x16x32xbf16, #tpu.memory_space<vmem>>, %arg10: memref<1x1x32xf32, #tpu.memory_space<vmem>>, %arg11: memref<1x1x32xf32, #tpu.memory_space<vmem>>, %arg12: memref<1x1x32xf32, #tpu.memory_space<vmem>>, %arg13: memref<1x3x32x64xbf16, #tpu.memory_space<vmem>>, %arg14: memref<1x1x64xf32, #tpu.memory_space<vmem>>, %arg15: memref<1x3x64x32xbf16, #tpu.memory_space<vmem>>, %arg16: memref<1x1x32xf32, #tpu.memory_space<vmem>>, %arg17: memref<1x1x32xf32, #tpu.memory_space<vmem>>, %arg18: memref<1x1x32xf32, #tpu.memory_space<vmem>>, %arg19: memref<8x32xbf16, #tpu.memory_space<vmem>>, %arg20: memref<8x1xf32, #tpu.memory_space<vmem>>, %arg21: memref<1x8x128xf32, #tpu.memory_space<vmem>>, %arg22: memref<16x32xf32, #tpu.memory_space<vmem>>) attributes {dimension_semantics = [#tpu.dimension_semantics<parallel>, #tpu.dimension_semantics<arbitrary>], iteration_bounds = array<i64: 2, 2>, scalar_prefetch = 0 : i64, scratch_operands = 1 : i64, tpu.core_type = #tpu.core_type<tc>, window_params = [{transform_indices = @transform_0, window_bounds = array<i64: 1, 16, 32>}, {transform_indices = @transform_1, window_bounds = array<i64: 1, 2, 32, 16>}, {transform_indices = @transform_2, window_bounds = array<i64: 1, 2, 32, 16>}, {transform_indices = @transform_3, window_bounds = array<i64: 1, 2, 32, 16>}, {transform_indices = @transform_4, window_bounds = array<i64: 1, 2, 1, 16>}, {transform_indices = @transform_5, window_bounds = array<i64: 1, 2, 1, 16>}, {transform_indices = @transform_6, window_bounds = array<i64: 1, 2, 1, 16>}, {transform_indices = @transform_7, window_bounds = array<i64: 1, 2, 16, 32>}, {transform_indices = @transform_8, window_bounds = array<i64: 1, 1, 32>}, {transform_indices = @transform_9, window_bounds = array<i64: 1, 1, 32>}, {transform_indices = @transform_10, window_bounds = array<i64: 1, 1, 32>}, {transform_indices = @transform_11, window_bounds = array<i64: 1, 3, 32, 64>}, {transform_indices = @transform_12, window_bounds = array<i64: 1, 1, 64>}, {transform_indices = @transform_13, window_bounds = array<i64: 1, 3, 64, 32>}, {transform_indices = @transform_14, window_bounds = array<i64: 1, 1, 32>}, {transform_indices = @transform_15, window_bounds = array<i64: 1, 1, 32>}, {transform_indices = @transform_16, window_bounds = array<i64: 1, 1, 32>}, {pipeline_mode = #tpu.pipeline_mode<synchronous>, transform_indices = @transform_17, window_bounds = array<i64: 8, 32>}, {pipeline_mode = #tpu.pipeline_mode<synchronous>, transform_indices = @transform_18, window_bounds = array<i64: 8, 1>}, {transform_indices = @transform_19, window_bounds = array<i64: 1, 8, 128>}]} {
    %c0_i32 = arith.constant 0 : i32
    %0 = arith.cmpi eq, %arg1, %c0_i32 : i32
    %1 = arith.extui %0 : i1 to i32
    %c0_i32_0 = arith.constant 0 : i32
    %2 = arith.cmpi ne, %1, %c0_i32_0 : i32
    scf.if %2 {
      %c0_153 = arith.constant 0 : index
      %c0_154 = arith.constant 0 : index
      %c0_155 = arith.constant 0 : index
      %237 = vector.load %arg2[%c0_153, %c0_154, %c0_155] : memref<1x16x32xbf16, #tpu.memory_space<vmem>>, vector<1x16x32xbf16>
      %238 = vector.shape_cast %237 : vector<1x16x32xbf16> to vector<16x32xbf16>
      %239 = arith.extf %238 : vector<16x32xbf16> to vector<16x32xf32>
      %c0_156 = arith.constant 0 : index
      %c0_157 = arith.constant 0 : index
      %240 = vector.load %arg22[%c0_156, %c0_157] : memref<16x32xf32, #tpu.memory_space<vmem>>, vector<16x32xf32>
      tpu.vector_store %arg22[%c0_156, %c0_157], %239 {strides = array<i32>} : memref<16x32xf32, #tpu.memory_space<vmem>>, vector<16x32xf32>,
    } else {
    }
    %c0 = arith.constant 0 : index
    %c0_1 = arith.constant 0 : index
    %3 = vector.load %arg22[%c0, %c0_1] : memref<16x32xf32, #tpu.memory_space<vmem>>, vector<16x32xf32>
    %4 = arith.truncf %3 : vector<16x32xf32> to vector<16x32xbf16>
    %c0_2 = arith.constant 0 : index
    %c0_3 = arith.constant 0 : index
    %c0_4 = arith.constant 0 : index
    %c0_5 = arith.constant 0 : index
    %5 = vector.load %arg3[%c0_2, %c0_3, %c0_4, %c0_5] : memref<1x2x32x16xbf16, #tpu.memory_space<vmem>>, vector<1x1x32x16xbf16>
    %6 = vector.shape_cast %5 : vector<1x1x32x16xbf16> to vector<32x16xbf16>
    %cst = arith.constant dense<0.000000e+00> : vector<16x16xf32>
    %7 = tpu.matmul %4, %6, %cst {dimension_numbers = #tpu.dot_dimension_numbers<[1], [0], [0], [1], [0, 0, 1, 1], [], []>} : vector<16x32xbf16>, vector<32x16xbf16>, vector<16x16xf32> -> vector<16x16xf32>
    %c0_6 = arith.constant 0 : index
    %c0_7 = arith.constant 0 : index
    %c0_8 = arith.constant 0 : index
    %c0_9 = arith.constant 0 : index
    %8 = vector.load %arg6[%c0_6, %c0_7, %c0_8, %c0_9] : memref<1x2x1x16xf32, #tpu.memory_space<vmem>>, vector<1x1x1x16xf32>
    %9 = vector.shape_cast %8 : vector<1x1x1x16xf32> to vector<1x16xf32>
    %10 = vector.broadcast %9 : vector<1x16xf32> to vector<16x16xf32>
    %11 = arith.addf %7, %10 : vector<16x16xf32>
    %c0_10 = arith.constant 0 : index
    %c0_11 = arith.constant 0 : index
    %c0_12 = arith.constant 0 : index
    %c0_13 = arith.constant 0 : index
    %12 = vector.load %arg4[%c0_10, %c0_11, %c0_12, %c0_13] : memref<1x2x32x16xbf16, #tpu.memory_space<vmem>>, vector<1x1x32x16xbf16>
    %13 = vector.shape_cast %12 : vector<1x1x32x16xbf16> to vector<32x16xbf16>
    %cst_14 = arith.constant dense<0.000000e+00> : vector<16x16xf32>
    %14 = tpu.matmul %4, %13, %cst_14 {dimension_numbers = #tpu.dot_dimension_numbers<[1], [0], [0], [1], [0, 0, 1, 1], [], []>} : vector<16x32xbf16>, vector<32x16xbf16>, vector<16x16xf32> -> vector<16x16xf32>
    %c0_15 = arith.constant 0 : index
    %c0_16 = arith.constant 0 : index
    %c0_17 = arith.constant 0 : index
    %c0_18 = arith.constant 0 : index
    %15 = vector.load %arg7[%c0_15, %c0_16, %c0_17, %c0_18] : memref<1x2x1x16xf32, #tpu.memory_space<vmem>>, vector<1x1x1x16xf32>
    %16 = vector.shape_cast %15 : vector<1x1x1x16xf32> to vector<1x16xf32>
    %17 = vector.broadcast %16 : vector<1x16xf32> to vector<16x16xf32>
    %18 = arith.addf %14, %17 : vector<16x16xf32>
    %c0_19 = arith.constant 0 : index
    %c0_20 = arith.constant 0 : index
    %c0_21 = arith.constant 0 : index
    %c0_22 = arith.constant 0 : index
    %19 = vector.load %arg5[%c0_19, %c0_20, %c0_21, %c0_22] : memref<1x2x32x16xbf16, #tpu.memory_space<vmem>>, vector<1x1x32x16xbf16>
    %20 = vector.shape_cast %19 : vector<1x1x32x16xbf16> to vector<32x16xbf16>
    %cst_23 = arith.constant dense<0.000000e+00> : vector<16x16xf32>
    %21 = tpu.matmul %4, %20, %cst_23 {dimension_numbers = #tpu.dot_dimension_numbers<[1], [0], [0], [1], [0, 0, 1, 1], [], []>} : vector<16x32xbf16>, vector<32x16xbf16>, vector<16x16xf32> -> vector<16x16xf32>
    %c0_24 = arith.constant 0 : index
    %c0_25 = arith.constant 0 : index
    %c0_26 = arith.constant 0 : index
    %c0_27 = arith.constant 0 : index
    %22 = vector.load %arg8[%c0_24, %c0_25, %c0_26, %c0_27] : memref<1x2x1x16xf32, #tpu.memory_space<vmem>>, vector<1x1x1x16xf32>
    %23 = vector.shape_cast %22 : vector<1x1x1x16xf32> to vector<1x16xf32>
    %24 = vector.broadcast %23 : vector<1x16xf32> to vector<16x16xf32>
    %25 = arith.addf %21, %24 : vector<16x16xf32>
    %26 = arith.truncf %11 : vector<16x16xf32> to vector<16x16xbf16>
    %27 = arith.truncf %18 : vector<16x16xf32> to vector<16x16xbf16>
    %cst_28 = arith.constant dense<0.000000e+00> : vector<16x16xf32>
    %28 = tpu.matmul %26, %27, %cst_28 {dimension_numbers = #tpu.dot_dimension_numbers<[1], [1], [0], [0], [0, 0, 1, 0], [], []>} : vector<16x16xbf16>, vector<16x16xbf16>, vector<16x16xf32> -> vector<16x16xf32>
    %cst_29 = arith.constant dense<0xFF800000> : vector<16xf32>
    %29 = vector.multi_reduction <maximumf>, %28, %cst_29 [1] : vector<16x16xf32> to vector<16xf32>
    %30 = vector.shape_cast %29 : vector<16xf32> to vector<16x1xf32>
    %31 = vector.broadcast %30 : vector<16x1xf32> to vector<16x16xf32>
    %32 = arith.subf %28, %31 : vector<16x16xf32>
    %33 = math.exp %32 : vector<16x16xf32>
    %cst_30 = arith.constant dense<0.000000e+00> : vector<16xf32>
    %34 = vector.multi_reduction <add>, %33, %cst_30 [1] : vector<16x16xf32> to vector<16xf32>
    %35 = vector.shape_cast %34 : vector<16xf32> to vector<16x1xf32>
    %36 = tpu.reciprocal %35 {approx = true} : vector<16x1xf32> -> vector<16x1xf32>
    %37 = arith.truncf %33 : vector<16x16xf32> to vector<16x16xbf16>
    %38 = arith.truncf %25 : vector<16x16xf32> to vector<16x16xbf16>
    %cst_31 = arith.constant dense<0.000000e+00> : vector<16x16xf32>
    %39 = tpu.matmul %37, %38, %cst_31 {dimension_numbers = #tpu.dot_dimension_numbers<[1], [0], [0], [1], [0, 0, 1, 1], [], []>} : vector<16x16xbf16>, vector<16x16xbf16>, vector<16x16xf32> -> vector<16x16xf32>
    %40 = vector.broadcast %36 : vector<16x1xf32> to vector<16x16xf32>
    %41 = arith.mulf %39, %40 : vector<16x16xf32>
    %42 = arith.truncf %41 : vector<16x16xf32> to vector<16x16xbf16>
    %c0_32 = arith.constant 0 : index
    %c0_33 = arith.constant 0 : index
    %c0_34 = arith.constant 0 : index
    %c0_35 = arith.constant 0 : index
    %43 = vector.load %arg9[%c0_32, %c0_33, %c0_34, %c0_35] : memref<1x2x16x32xbf16, #tpu.memory_space<vmem>>, vector<1x1x16x32xbf16>
    %44 = vector.shape_cast %43 : vector<1x1x16x32xbf16> to vector<16x32xbf16>
    %cst_36 = arith.constant dense<0.000000e+00> : vector<16x32xf32>
    %45 = tpu.matmul %42, %44, %cst_36 {dimension_numbers = #tpu.dot_dimension_numbers<[1], [0], [0], [1], [0, 0, 1, 1], [], []>} : vector<16x16xbf16>, vector<16x32xbf16>, vector<16x32xf32> -> vector<16x32xf32>
    %c0_37 = arith.constant 0 : index
    %c1 = arith.constant 1 : index
    %c0_38 = arith.constant 0 : index
    %c0_39 = arith.constant 0 : index
    %46 = vector.load %arg3[%c0_37, %c1, %c0_38, %c0_39] : memref<1x2x32x16xbf16, #tpu.memory_space<vmem>>, vector<1x1x32x16xbf16>
    %47 = vector.shape_cast %46 : vector<1x1x32x16xbf16> to vector<32x16xbf16>
    %cst_40 = arith.constant dense<0.000000e+00> : vector<16x16xf32>
    %48 = tpu.matmul %4, %47, %cst_40 {dimension_numbers = #tpu.dot_dimension_numbers<[1], [0], [0], [1], [0, 0, 1, 1], [], []>} : vector<16x32xbf16>, vector<32x16xbf16>, vector<16x16xf32> -> vector<16x16xf32>
    %c0_41 = arith.constant 0 : index
    %c1_42 = arith.constant 1 : index
    %c0_43 = arith.constant 0 : index
    %c0_44 = arith.constant 0 : index
    %49 = vector.load %arg6[%c0_41, %c1_42, %c0_43, %c0_44] : memref<1x2x1x16xf32, #tpu.memory_space<vmem>>, vector<1x1x1x16xf32>
    %50 = vector.shape_cast %49 : vector<1x1x1x16xf32> to vector<1x16xf32>
    %51 = vector.broadcast %50 : vector<1x16xf32> to vector<16x16xf32>
    %52 = arith.addf %48, %51 : vector<16x16xf32>
    %c0_45 = arith.constant 0 : index
    %c1_46 = arith.constant 1 : index
    %c0_47 = arith.constant 0 : index
    %c0_48 = arith.constant 0 : index
    %53 = vector.load %arg4[%c0_45, %c1_46, %c0_47, %c0_48] : memref<1x2x32x16xbf16, #tpu.memory_space<vmem>>, vector<1x1x32x16xbf16>
    %54 = vector.shape_cast %53 : vector<1x1x32x16xbf16> to vector<32x16xbf16>
    %cst_49 = arith.constant dense<0.000000e+00> : vector<16x16xf32>
    %55 = tpu.matmul %4, %54, %cst_49 {dimension_numbers = #tpu.dot_dimension_numbers<[1], [0], [0], [1], [0, 0, 1, 1], [], []>} : vector<16x32xbf16>, vector<32x16xbf16>, vector<16x16xf32> -> vector<16x16xf32>
    %c0_50 = arith.constant 0 : index
    %c1_51 = arith.constant 1 : index
    %c0_52 = arith.constant 0 : index
    %c0_53 = arith.constant 0 : index
    %56 = vector.load %arg7[%c0_50, %c1_51, %c0_52, %c0_53] : memref<1x2x1x16xf32, #tpu.memory_space<vmem>>, vector<1x1x1x16xf32>
    %57 = vector.shape_cast %56 : vector<1x1x1x16xf32> to vector<1x16xf32>
    %58 = vector.broadcast %57 : vector<1x16xf32> to vector<16x16xf32>
    %59 = arith.addf %55, %58 : vector<16x16xf32>
    %c0_54 = arith.constant 0 : index
    %c1_55 = arith.constant 1 : index
    %c0_56 = arith.constant 0 : index
    %c0_57 = arith.constant 0 : index
    %60 = vector.load %arg5[%c0_54, %c1_55, %c0_56, %c0_57] : memref<1x2x32x16xbf16, #tpu.memory_space<vmem>>, vector<1x1x32x16xbf16>
    %61 = vector.shape_cast %60 : vector<1x1x32x16xbf16> to vector<32x16xbf16>
    %cst_58 = arith.constant dense<0.000000e+00> : vector<16x16xf32>
    %62 = tpu.matmul %4, %61, %cst_58 {dimension_numbers = #tpu.dot_dimension_numbers<[1], [0], [0], [1], [0, 0, 1, 1], [], []>} : vector<16x32xbf16>, vector<32x16xbf16>, vector<16x16xf32> -> vector<16x16xf32>
    %c0_59 = arith.constant 0 : index
    %c1_60 = arith.constant 1 : index
    %c0_61 = arith.constant 0 : index
    %c0_62 = arith.constant 0 : index
    %63 = vector.load %arg8[%c0_59, %c1_60, %c0_61, %c0_62] : memref<1x2x1x16xf32, #tpu.memory_space<vmem>>, vector<1x1x1x16xf32>
    %64 = vector.shape_cast %63 : vector<1x1x1x16xf32> to vector<1x16xf32>
    %65 = vector.broadcast %64 : vector<1x16xf32> to vector<16x16xf32>
    %66 = arith.addf %62, %65 : vector<16x16xf32>
    %67 = arith.truncf %52 : vector<16x16xf32> to vector<16x16xbf16>
    %68 = arith.truncf %59 : vector<16x16xf32> to vector<16x16xbf16>
    %cst_63 = arith.constant dense<0.000000e+00> : vector<16x16xf32>
    %69 = tpu.matmul %67, %68, %cst_63 {dimension_numbers = #tpu.dot_dimension_numbers<[1], [1], [0], [0], [0, 0, 1, 0], [], []>} : vector<16x16xbf16>, vector<16x16xbf16>, vector<16x16xf32> -> vector<16x16xf32>
    %cst_64 = arith.constant dense<0xFF800000> : vector<16xf32>
    %70 = vector.multi_reduction <maximumf>, %69, %cst_64 [1] : vector<16x16xf32> to vector<16xf32>
    %71 = vector.shape_cast %70 : vector<16xf32> to vector<16x1xf32>
    %72 = vector.broadcast %71 : vector<16x1xf32> to vector<16x16xf32>
    %73 = arith.subf %69, %72 : vector<16x16xf32>
    %74 = math.exp %73 : vector<16x16xf32>
    %cst_65 = arith.constant dense<0.000000e+00> : vector<16xf32>
    %75 = vector.multi_reduction <add>, %74, %cst_65 [1] : vector<16x16xf32> to vector<16xf32>
    %76 = vector.shape_cast %75 : vector<16xf32> to vector<16x1xf32>
    %77 = tpu.reciprocal %76 {approx = true} : vector<16x1xf32> -> vector<16x1xf32>
    %78 = arith.truncf %74 : vector<16x16xf32> to vector<16x16xbf16>
    %79 = arith.truncf %66 : vector<16x16xf32> to vector<16x16xbf16>
    %cst_66 = arith.constant dense<0.000000e+00> : vector<16x16xf32>
    %80 = tpu.matmul %78, %79, %cst_66 {dimension_numbers = #tpu.dot_dimension_numbers<[1], [0], [0], [1], [0, 0, 1, 1], [], []>} : vector<16x16xbf16>, vector<16x16xbf16>, vector<16x16xf32> -> vector<16x16xf32>
    %81 = vector.broadcast %77 : vector<16x1xf32> to vector<16x16xf32>
    %82 = arith.mulf %80, %81 : vector<16x16xf32>
    %83 = arith.truncf %82 : vector<16x16xf32> to vector<16x16xbf16>
    %c0_67 = arith.constant 0 : index
    %c1_68 = arith.constant 1 : index
    %c0_69 = arith.constant 0 : index
    %c0_70 = arith.constant 0 : index
    %84 = vector.load %arg9[%c0_67, %c1_68, %c0_69, %c0_70] : memref<1x2x16x32xbf16, #tpu.memory_space<vmem>>, vector<1x1x16x32xbf16>
    %85 = vector.shape_cast %84 : vector<1x1x16x32xbf16> to vector<16x32xbf16>
    %cst_71 = arith.constant dense<0.000000e+00> : vector<16x32xf32>
    %86 = tpu.matmul %83, %85, %cst_71 {dimension_numbers = #tpu.dot_dimension_numbers<[1], [0], [0], [1], [0, 0, 1, 1], [], []>} : vector<16x16xbf16>, vector<16x32xbf16>, vector<16x32xf32> -> vector<16x32xf32>
    %87 = arith.addf %45, %86 : vector<16x32xf32>
    %c0_72 = arith.constant 0 : index
    %c0_73 = arith.constant 0 : index
    %c0_74 = arith.constant 0 : index
    %88 = vector.load %arg10[%c0_72, %c0_73, %c0_74] : memref<1x1x32xf32, #tpu.memory_space<vmem>>, vector<1x1x32xf32>
    %89 = vector.shape_cast %88 : vector<1x1x32xf32> to vector<1x32xf32>
    %90 = vector.broadcast %89 : vector<1x32xf32> to vector<16x32xf32>
    %91 = arith.addf %87, %90 : vector<16x32xf32>
    %92 = arith.addf %91, %3 : vector<16x32xf32>
    %c0_75 = arith.constant 0 : index
    %c0_76 = arith.constant 0 : index
    %c0_77 = arith.constant 0 : index
    %93 = vector.load %arg11[%c0_75, %c0_76, %c0_77] : memref<1x1x32xf32, #tpu.memory_space<vmem>>, vector<1x1x32xf32>
    %94 = vector.shape_cast %93 : vector<1x1x32xf32> to vector<1x32xf32>
    %c0_78 = arith.constant 0 : index
    %c0_79 = arith.constant 0 : index
    %c0_80 = arith.constant 0 : index
    %95 = vector.load %arg12[%c0_78, %c0_79, %c0_80] : memref<1x1x32xf32, #tpu.memory_space<vmem>>, vector<1x1x32xf32>
    %96 = vector.shape_cast %95 : vector<1x1x32xf32> to vector<1x32xf32>
    %cst_81 = arith.constant dense<0.000000e+00> : vector<16xf32>
    %97 = vector.multi_reduction <add>, %92, %cst_81 [1] : vector<16x32xf32> to vector<16xf32>
    %98 = vector.shape_cast %97 : vector<16xf32> to vector<16x1xf32>
    %cst_82 = arith.constant 3.200000e+01 : f32
    %99 = vector.broadcast %cst_82 : f32 to vector<16x1xf32>
    %100 = arith.divf %98, %99 : vector<16x1xf32>
    %101 = vector.broadcast %100 : vector<16x1xf32> to vector<16x32xf32>
    %102 = arith.subf %92, %101 : vector<16x32xf32>
    %103 = arith.mulf %102, %102 : vector<16x32xf32>
    %cst_83 = arith.constant dense<0.000000e+00> : vector<16xf32>
    %104 = vector.multi_reduction <add>, %103, %cst_83 [1] : vector<16x32xf32> to vector<16xf32>
    %105 = vector.shape_cast %104 : vector<16xf32> to vector<16x1xf32>
    %cst_84 = arith.constant 3.200000e+01 : f32
    %106 = vector.broadcast %cst_84 : f32 to vector<16x1xf32>
    %107 = arith.divf %105, %106 : vector<16x1xf32>
    %108 = vector.broadcast %100 : vector<16x1xf32> to vector<16x32xf32>
    %109 = arith.subf %92, %108 : vector<16x32xf32>
    %cst_85 = arith.constant 9.99999974E-6 : f32
    %110 = vector.broadcast %cst_85 : f32 to vector<16x1xf32>
    %111 = arith.addf %107, %110 : vector<16x1xf32>
    %112 = math.rsqrt %111 : vector<16x1xf32>
    %113 = vector.broadcast %112 : vector<16x1xf32> to vector<16x32xf32>
    %114 = arith.mulf %109, %113 : vector<16x32xf32>
    %115 = vector.broadcast %94 : vector<1x32xf32> to vector<16x32xf32>
    %116 = arith.mulf %114, %115 : vector<16x32xf32>
    %117 = vector.broadcast %96 : vector<1x32xf32> to vector<16x32xf32>
    %118 = arith.addf %116, %117 : vector<16x32xf32>
    %119 = tpu.iota {dimensions = array<i32: 0>} : vector<16x1xi32>
    %c1_i32 = arith.constant 1 : i32
    %120 = tpu.dynamic_rotate %118 by %c1_i32 dim 0 : vector<16x32xf32>, i32 -> vector<16x32xf32>
    %c-1_i32 = arith.constant -1 : i32
    %121 = vector.broadcast %c-1_i32 : i32 to vector<16x1xi32>
    %122 = arith.addi %119, %121 : vector<16x1xi32>
    %c0_i32_86 = arith.constant 0 : i32
    %123 = vector.broadcast %c0_i32_86 : i32 to vector<16x1xi32>
    %124 = arith.cmpi sge, %122, %123 : vector<16x1xi32>
    %c16_i32 = arith.constant 16 : i32
    %125 = vector.broadcast %c16_i32 : i32 to vector<16x1xi32>
    %126 = arith.cmpi slt, %122, %125 : vector<16x1xi32>
    %127 = arith.andi %124, %126 : vector<16x1xi1>
    %cst_87 = arith.constant 0.000000e+00 : f32
    %128 = vector.shape_cast %127 : vector<16x1xi1> to vector<16x1xi1>
    %129 = vector.broadcast %128 : vector<16x1xi1> to vector<16x32xi1>
    %130 = vector.broadcast %cst_87 : f32 to vector<16x32xf32>
    %131 = arith.select %129, %120, %130 : vector<16x32xi1>, vector<16x32xf32>
    %132 = arith.truncf %131 : vector<16x32xf32> to vector<16x32xbf16>
    %c0_88 = arith.constant 0 : index
    %c0_89 = arith.constant 0 : index
    %c0_90 = arith.constant 0 : index
    %c0_91 = arith.constant 0 : index
    %133 = vector.load %arg13[%c0_88, %c0_89, %c0_90, %c0_91] : memref<1x3x32x64xbf16, #tpu.memory_space<vmem>>, vector<1x1x32x64xbf16>
    %134 = vector.shape_cast %133 : vector<1x1x32x64xbf16> to vector<32x64xbf16>
    %cst_92 = arith.constant dense<0.000000e+00> : vector<16x64xf32>
    %135 = tpu.matmul %132, %134, %cst_92 {dimension_numbers = #tpu.dot_dimension_numbers<[1], [0], [0], [1], [0, 0, 1, 1], [], []>} : vector<16x32xbf16>, vector<32x64xbf16>, vector<16x64xf32> -> vector<16x64xf32>
    %136 = arith.truncf %118 : vector<16x32xf32> to vector<16x32xbf16>
    %c0_93 = arith.constant 0 : index
    %c1_94 = arith.constant 1 : index
    %c0_95 = arith.constant 0 : index
    %c0_96 = arith.constant 0 : index
    %137 = vector.load %arg13[%c0_93, %c1_94, %c0_95, %c0_96] : memref<1x3x32x64xbf16, #tpu.memory_space<vmem>>, vector<1x1x32x64xbf16>
    %138 = vector.shape_cast %137 : vector<1x1x32x64xbf16> to vector<32x64xbf16>
    %cst_97 = arith.constant dense<0.000000e+00> : vector<16x64xf32>
    %139 = tpu.matmul %136, %138, %cst_97 {dimension_numbers = #tpu.dot_dimension_numbers<[1], [0], [0], [1], [0, 0, 1, 1], [], []>} : vector<16x32xbf16>, vector<32x64xbf16>, vector<16x64xf32> -> vector<16x64xf32>
    %140 = arith.addf %135, %139 : vector<16x64xf32>
    %c15_i32 = arith.constant 15 : i32
    %141 = tpu.dynamic_rotate %118 by %c15_i32 dim 0 : vector<16x32xf32>, i32 -> vector<16x32xf32>
    %c1_i32_98 = arith.constant 1 : i32
    %142 = vector.broadcast %c1_i32_98 : i32 to vector<16x1xi32>
    %143 = arith.addi %119, %142 : vector<16x1xi32>
    %c0_i32_99 = arith.constant 0 : i32
    %144 = vector.broadcast %c0_i32_99 : i32 to vector<16x1xi32>
    %145 = arith.cmpi sge, %143, %144 : vector<16x1xi32>
    %c16_i32_100 = arith.constant 16 : i32
    %146 = vector.broadcast %c16_i32_100 : i32 to vector<16x1xi32>
    %147 = arith.cmpi slt, %143, %146 : vector<16x1xi32>
    %148 = arith.andi %145, %147 : vector<16x1xi1>
    %cst_101 = arith.constant 0.000000e+00 : f32
    %149 = vector.shape_cast %148 : vector<16x1xi1> to vector<16x1xi1>
    %150 = vector.broadcast %149 : vector<16x1xi1> to vector<16x32xi1>
    %151 = vector.broadcast %cst_101 : f32 to vector<16x32xf32>
    %152 = arith.select %150, %141, %151 : vector<16x32xi1>, vector<16x32xf32>
    %153 = arith.truncf %152 : vector<16x32xf32> to vector<16x32xbf16>
    %c0_102 = arith.constant 0 : index
    %c2 = arith.constant 2 : index
    %c0_103 = arith.constant 0 : index
    %c0_104 = arith.constant 0 : index
    %154 = vector.load %arg13[%c0_102, %c2, %c0_103, %c0_104] : memref<1x3x32x64xbf16, #tpu.memory_space<vmem>>, vector<1x1x32x64xbf16>
    %155 = vector.shape_cast %154 : vector<1x1x32x64xbf16> to vector<32x64xbf16>
    %cst_105 = arith.constant dense<0.000000e+00> : vector<16x64xf32>
    %156 = tpu.matmul %153, %155, %cst_105 {dimension_numbers = #tpu.dot_dimension_numbers<[1], [0], [0], [1], [0, 0, 1, 1], [], []>} : vector<16x32xbf16>, vector<32x64xbf16>, vector<16x64xf32> -> vector<16x64xf32>
    %157 = arith.addf %140, %156 : vector<16x64xf32>
    %c0_106 = arith.constant 0 : index
    %c0_107 = arith.constant 0 : index
    %c0_108 = arith.constant 0 : index
    %158 = vector.load %arg14[%c0_106, %c0_107, %c0_108] : memref<1x1x64xf32, #tpu.memory_space<vmem>>, vector<1x1x64xf32>
    %159 = vector.shape_cast %158 : vector<1x1x64xf32> to vector<1x64xf32>
    %160 = vector.broadcast %159 : vector<1x64xf32> to vector<16x64xf32>
    %161 = arith.addf %157, %160 : vector<16x64xf32>
    %cst_109 = arith.constant 0.000000e+00 : f32
    %162 = vector.broadcast %cst_109 : f32 to vector<16x64xf32>
    %163 = arith.maximumf %161, %162 : vector<16x64xf32>
    %c1_i32_110 = arith.constant 1 : i32
    %164 = tpu.dynamic_rotate %163 by %c1_i32_110 dim 0 : vector<16x64xf32>, i32 -> vector<16x64xf32>
    %c-1_i32_111 = arith.constant -1 : i32
    %165 = vector.broadcast %c-1_i32_111 : i32 to vector<16x1xi32>
    %166 = arith.addi %119, %165 : vector<16x1xi32>
    %c0_i32_112 = arith.constant 0 : i32
    %167 = vector.broadcast %c0_i32_112 : i32 to vector<16x1xi32>
    %168 = arith.cmpi sge, %166, %167 : vector<16x1xi32>
    %c16_i32_113 = arith.constant 16 : i32
    %169 = vector.broadcast %c16_i32_113 : i32 to vector<16x1xi32>
    %170 = arith.cmpi slt, %166, %169 : vector<16x1xi32>
    %171 = arith.andi %168, %170 : vector<16x1xi1>
    %cst_114 = arith.constant 0.000000e+00 : f32
    %172 = vector.shape_cast %171 : vector<16x1xi1> to vector<16x1xi1>
    %173 = vector.broadcast %172 : vector<16x1xi1> to vector<16x64xi1>
    %174 = vector.broadcast %cst_114 : f32 to vector<16x64xf32>
    %175 = arith.select %173, %164, %174 : vector<16x64xi1>, vector<16x64xf32>
    %176 = arith.truncf %175 : vector<16x64xf32> to vector<16x64xbf16>
    %c0_115 = arith.constant 0 : index
    %c0_116 = arith.constant 0 : index
    %c0_117 = arith.constant 0 : index
    %c0_118 = arith.constant 0 : index
    %177 = vector.load %arg15[%c0_115, %c0_116, %c0_117, %c0_118] : memref<1x3x64x32xbf16, #tpu.memory_space<vmem>>, vector<1x1x64x32xbf16>
    %178 = vector.shape_cast %177 : vector<1x1x64x32xbf16> to vector<64x32xbf16>
    %cst_119 = arith.constant dense<0.000000e+00> : vector<16x32xf32>
    %179 = tpu.matmul %176, %178, %cst_119 {dimension_numbers = #tpu.dot_dimension_numbers<[1], [0], [0], [1], [0, 0, 1, 1], [], []>} : vector<16x64xbf16>, vector<64x32xbf16>, vector<16x32xf32> -> vector<16x32xf32>
    %180 = arith.truncf %163 : vector<16x64xf32> to vector<16x64xbf16>
    %c0_120 = arith.constant 0 : index
    %c1_121 = arith.constant 1 : index
    %c0_122 = arith.constant 0 : index
    %c0_123 = arith.constant 0 : index
    %181 = vector.load %arg15[%c0_120, %c1_121, %c0_122, %c0_123] : memref<1x3x64x32xbf16, #tpu.memory_space<vmem>>, vector<1x1x64x32xbf16>
    %182 = vector.shape_cast %181 : vector<1x1x64x32xbf16> to vector<64x32xbf16>
    %cst_124 = arith.constant dense<0.000000e+00> : vector<16x32xf32>
    %183 = tpu.matmul %180, %182, %cst_124 {dimension_numbers = #tpu.dot_dimension_numbers<[1], [0], [0], [1], [0, 0, 1, 1], [], []>} : vector<16x64xbf16>, vector<64x32xbf16>, vector<16x32xf32> -> vector<16x32xf32>
    %184 = arith.addf %179, %183 : vector<16x32xf32>
    %c15_i32_125 = arith.constant 15 : i32
    %185 = tpu.dynamic_rotate %163 by %c15_i32_125 dim 0 : vector<16x64xf32>, i32 -> vector<16x64xf32>
    %c1_i32_126 = arith.constant 1 : i32
    %186 = vector.broadcast %c1_i32_126 : i32 to vector<16x1xi32>
    %187 = arith.addi %119, %186 : vector<16x1xi32>
    %c0_i32_127 = arith.constant 0 : i32
    %188 = vector.broadcast %c0_i32_127 : i32 to vector<16x1xi32>
    %189 = arith.cmpi sge, %187, %188 : vector<16x1xi32>
    %c16_i32_128 = arith.constant 16 : i32
    %190 = vector.broadcast %c16_i32_128 : i32 to vector<16x1xi32>
    %191 = arith.cmpi slt, %187, %190 : vector<16x1xi32>
    %192 = arith.andi %189, %191 : vector<16x1xi1>
    %cst_129 = arith.constant 0.000000e+00 : f32
    %193 = vector.shape_cast %192 : vector<16x1xi1> to vector<16x1xi1>
    %194 = vector.broadcast %193 : vector<16x1xi1> to vector<16x64xi1>
    %195 = vector.broadcast %cst_129 : f32 to vector<16x64xf32>
    %196 = arith.select %194, %185, %195 : vector<16x64xi1>, vector<16x64xf32>
    %197 = arith.truncf %196 : vector<16x64xf32> to vector<16x64xbf16>
    %c0_130 = arith.constant 0 : index
    %c2_131 = arith.constant 2 : index
    %c0_132 = arith.constant 0 : index
    %c0_133 = arith.constant 0 : index
    %198 = vector.load %arg15[%c0_130, %c2_131, %c0_132, %c0_133] : memref<1x3x64x32xbf16, #tpu.memory_space<vmem>>, vector<1x1x64x32xbf16>
    %199 = vector.shape_cast %198 : vector<1x1x64x32xbf16> to vector<64x32xbf16>
    %cst_134 = arith.constant dense<0.000000e+00> : vector<16x32xf32>
    %200 = tpu.matmul %197, %199, %cst_134 {dimension_numbers = #tpu.dot_dimension_numbers<[1], [0], [0], [1], [0, 0, 1, 1], [], []>} : vector<16x64xbf16>, vector<64x32xbf16>, vector<16x32xf32> -> vector<16x32xf32>
    %201 = arith.addf %184, %200 : vector<16x32xf32>
    %c0_135 = arith.constant 0 : index
    %c0_136 = arith.constant 0 : index
    %c0_137 = arith.constant 0 : index
    %202 = vector.load %arg16[%c0_135, %c0_136, %c0_137] : memref<1x1x32xf32, #tpu.memory_space<vmem>>, vector<1x1x32xf32>
    %203 = vector.shape_cast %202 : vector<1x1x32xf32> to vector<1x32xf32>
    %204 = vector.broadcast %203 : vector<1x32xf32> to vector<16x32xf32>
    %205 = arith.addf %201, %204 : vector<16x32xf32>
    %206 = arith.addf %205, %118 : vector<16x32xf32>
    %c0_138 = arith.constant 0 : index
    %c0_139 = arith.constant 0 : index
    %c0_140 = arith.constant 0 : index
    %207 = vector.load %arg17[%c0_138, %c0_139, %c0_140] : memref<1x1x32xf32, #tpu.memory_space<vmem>>, vector<1x1x32xf32>
    %208 = vector.shape_cast %207 : vector<1x1x32xf32> to vector<1x32xf32>
    %c0_141 = arith.constant 0 : index
    %c0_142 = arith.constant 0 : index
    %c0_143 = arith.constant 0 : index
    %209 = vector.load %arg18[%c0_141, %c0_142, %c0_143] : memref<1x1x32xf32, #tpu.memory_space<vmem>>, vector<1x1x32xf32>
    %210 = vector.shape_cast %209 : vector<1x1x32xf32> to vector<1x32xf32>
    %cst_144 = arith.constant dense<0.000000e+00> : vector<16xf32>
    %211 = vector.multi_reduction <add>, %206, %cst_144 [1] : vector<16x32xf32> to vector<16xf32>
    %212 = vector.shape_cast %211 : vector<16xf32> to vector<16x1xf32>
    %cst_145 = arith.constant 3.200000e+01 : f32
    %213 = vector.broadcast %cst_145 : f32 to vector<16x1xf32>
    %214 = arith.divf %212, %213 : vector<16x1xf32>
    %215 = vector.broadcast %214 : vector<16x1xf32> to vector<16x32xf32>
    %216 = arith.subf %206, %215 : vector<16x32xf32>
    %217 = arith.mulf %216, %216 : vector<16x32xf32>
    %cst_146 = arith.constant dense<0.000000e+00> : vector<16xf32>
    %218 = vector.multi_reduction <add>, %217, %cst_146 [1] : vector<16x32xf32> to vector<16xf32>
    %219 = vector.shape_cast %218 : vector<16xf32> to vector<16x1xf32>
    %cst_147 = arith.constant 3.200000e+01 : f32
    %220 = vector.broadcast %cst_147 : f32 to vector<16x1xf32>
    %221 = arith.divf %219, %220 : vector<16x1xf32>
    %222 = vector.broadcast %214 : vector<16x1xf32> to vector<16x32xf32>
    %223 = arith.subf %206, %222 : vector<16x32xf32>
    %cst_148 = arith.constant 9.99999974E-6 : f32
    %224 = vector.broadcast %cst_148 : f32 to vector<16x1xf32>
    %225 = arith.addf %221, %224 : vector<16x1xf32>
    %226 = math.rsqrt %225 : vector<16x1xf32>
    %227 = vector.broadcast %226 : vector<16x1xf32> to vector<16x32xf32>
    %228 = arith.mulf %223, %227 : vector<16x32xf32>
    %229 = vector.broadcast %208 : vector<1x32xf32> to vector<16x32xf32>
    %230 = arith.mulf %228, %229 : vector<16x32xf32>
    %231 = vector.broadcast %210 : vector<1x32xf32> to vector<16x32xf32>
    %232 = arith.addf %230, %231 : vector<16x32xf32>
    %c0_149 = arith.constant 0 : index
    %c0_150 = arith.constant 0 : index
    %233 = vector.load %arg22[%c0_149, %c0_150] : memref<16x32xf32, #tpu.memory_space<vmem>>, vector<16x32xf32>
    tpu.vector_store %arg22[%c0_149, %c0_150], %232 {strides = array<i32>} : memref<16x32xf32, #tpu.memory_space<vmem>>, vector<16x32xf32>,
    %c1_i32_151 = arith.constant 1 : i32
    %234 = arith.cmpi eq, %arg1, %c1_i32_151 : i32
    %235 = arith.extui %234 : i1 to i32
    %c0_i32_152 = arith.constant 0 : i32
    %236 = arith.cmpi ne, %235, %c0_i32_152 : i32
    scf.if %236 {
      %c0_153 = arith.constant 0 : index
      %c0_154 = arith.constant 0 : index
      %237 = vector.load %arg19[%c0_153, %c0_154] : memref<8x32xbf16, #tpu.memory_space<vmem>>, vector<8x32xbf16>
      %238 = arith.truncf %232 : vector<16x32xf32> to vector<16x32xbf16>
      %cst_155 = arith.constant dense<0.000000e+00> : vector<8x16xf32>
      %239 = tpu.matmul %237, %238, %cst_155 {dimension_numbers = #tpu.dot_dimension_numbers<[1], [1], [0], [0], [0, 0, 1, 0], [], []>} : vector<8x32xbf16>, vector<16x32xbf16>, vector<8x16xf32> -> vector<8x16xf32>
      %c0_156 = arith.constant 0 : index
      %c0_157 = arith.constant 0 : index
      %240 = vector.load %arg20[%c0_156, %c0_157] : memref<8x1xf32, #tpu.memory_space<vmem>>, vector<8x1xf32>
      %241 = vector.broadcast %240 : vector<8x1xf32> to vector<8x16xf32>
      %242 = arith.addf %239, %241 : vector<8x16xf32>
      %cst_158 = arith.constant 0.000000e+00 : f32
      %243 = vector.broadcast %cst_158 : f32 to vector<8x112xf32>
      %244 = tpu.concatenate %242, %243 in 1 : vector<8x16xf32>, vector<8x112xf32> -> vector<8x128xf32>
      %c0_159 = arith.constant 0 : index
      %c0_160 = arith.constant 0 : index
      %c0_161 = arith.constant 0 : index
      %245 = vector.load %arg21[%c0_159, %c0_160, %c0_161] : memref<1x8x128xf32, #tpu.memory_space<vmem>>, vector<1x8x128xf32>
      %246 = vector.shape_cast %245 : vector<1x8x128xf32> to vector<8x128xf32>
      %247 = vector.shape_cast %244 : vector<8x128xf32> to vector<1x8x128xf32>
      tpu.vector_store %arg21[%c0_159, %c0_160, %c0_161], %247 {strides = array<i32>} : memref<1x8x128xf32, #tpu.memory_space<vmem>>, vector<1x8x128xf32>,
    } else {
    }
    return
  }
  func.func @transform_0(%arg0: i32, %arg1: i32) -> (i32, i32, i32) {
    %c0_i32 = arith.constant 0 : i32
    %c0_i32_0 = arith.constant 0 : i32
    %c0_i32_1 = arith.constant 0 : i32
    return %arg0, %c0_i32, %c0_i32_0 : i32, i32, i32
  }
  func.func @transform_1(%arg0: i32, %arg1: i32) -> (i32, i32, i32, i32) {
    %c0_i32 = arith.constant 0 : i32
    %c0_i32_0 = arith.constant 0 : i32
    %c0_i32_1 = arith.constant 0 : i32
    %c0_i32_2 = arith.constant 0 : i32
    return %arg1, %c0_i32, %c0_i32_0, %c0_i32_1 : i32, i32, i32, i32
  }
  func.func @transform_2(%arg0: i32, %arg1: i32) -> (i32, i32, i32, i32) {
    %c0_i32 = arith.constant 0 : i32
    %c0_i32_0 = arith.constant 0 : i32
    %c0_i32_1 = arith.constant 0 : i32
    %c0_i32_2 = arith.constant 0 : i32
    return %arg1, %c0_i32, %c0_i32_0, %c0_i32_1 : i32, i32, i32, i32
  }
  func.func @transform_3(%arg0: i32, %arg1: i32) -> (i32, i32, i32, i32) {
    %c0_i32 = arith.constant 0 : i32
    %c0_i32_0 = arith.constant 0 : i32
    %c0_i32_1 = arith.constant 0 : i32
    %c0_i32_2 = arith.constant 0 : i32
    return %arg1, %c0_i32, %c0_i32_0, %c0_i32_1 : i32, i32, i32, i32
  }
  func.func @transform_4(%arg0: i32, %arg1: i32) -> (i32, i32, i32, i32) {
    %c0_i32 = arith.constant 0 : i32
    %c0_i32_0 = arith.constant 0 : i32
    %c0_i32_1 = arith.constant 0 : i32
    %c0_i32_2 = arith.constant 0 : i32
    return %arg1, %c0_i32, %c0_i32_0, %c0_i32_1 : i32, i32, i32, i32
  }
  func.func @transform_5(%arg0: i32, %arg1: i32) -> (i32, i32, i32, i32) {
    %c0_i32 = arith.constant 0 : i32
    %c0_i32_0 = arith.constant 0 : i32
    %c0_i32_1 = arith.constant 0 : i32
    %c0_i32_2 = arith.constant 0 : i32
    return %arg1, %c0_i32, %c0_i32_0, %c0_i32_1 : i32, i32, i32, i32
  }
  func.func @transform_6(%arg0: i32, %arg1: i32) -> (i32, i32, i32, i32) {
    %c0_i32 = arith.constant 0 : i32
    %c0_i32_0 = arith.constant 0 : i32
    %c0_i32_1 = arith.constant 0 : i32
    %c0_i32_2 = arith.constant 0 : i32
    return %arg1, %c0_i32, %c0_i32_0, %c0_i32_1 : i32, i32, i32, i32
  }
  func.func @transform_7(%arg0: i32, %arg1: i32) -> (i32, i32, i32, i32) {
    %c0_i32 = arith.constant 0 : i32
    %c0_i32_0 = arith.constant 0 : i32
    %c0_i32_1 = arith.constant 0 : i32
    %c0_i32_2 = arith.constant 0 : i32
    return %arg1, %c0_i32, %c0_i32_0, %c0_i32_1 : i32, i32, i32, i32
  }
  func.func @transform_8(%arg0: i32, %arg1: i32) -> (i32, i32, i32) {
    %c0_i32 = arith.constant 0 : i32
    %c0_i32_0 = arith.constant 0 : i32
    %c0_i32_1 = arith.constant 0 : i32
    return %arg1, %c0_i32, %c0_i32_0 : i32, i32, i32
  }
  func.func @transform_9(%arg0: i32, %arg1: i32) -> (i32, i32, i32) {
    %c0_i32 = arith.constant 0 : i32
    %c0_i32_0 = arith.constant 0 : i32
    %c0_i32_1 = arith.constant 0 : i32
    return %arg1, %c0_i32, %c0_i32_0 : i32, i32, i32
  }
  func.func @transform_10(%arg0: i32, %arg1: i32) -> (i32, i32, i32) {
    %c0_i32 = arith.constant 0 : i32
    %c0_i32_0 = arith.constant 0 : i32
    %c0_i32_1 = arith.constant 0 : i32
    return %arg1, %c0_i32, %c0_i32_0 : i32, i32, i32
  }
  func.func @transform_11(%arg0: i32, %arg1: i32) -> (i32, i32, i32, i32) {
    %c0_i32 = arith.constant 0 : i32
    %c0_i32_0 = arith.constant 0 : i32
    %c0_i32_1 = arith.constant 0 : i32
    %c0_i32_2 = arith.constant 0 : i32
    return %arg1, %c0_i32, %c0_i32_0, %c0_i32_1 : i32, i32, i32, i32
  }
  func.func @transform_12(%arg0: i32, %arg1: i32) -> (i32, i32, i32) {
    %c0_i32 = arith.constant 0 : i32
    %c0_i32_0 = arith.constant 0 : i32
    %c0_i32_1 = arith.constant 0 : i32
    return %arg1, %c0_i32, %c0_i32_0 : i32, i32, i32
  }
  func.func @transform_13(%arg0: i32, %arg1: i32) -> (i32, i32, i32, i32) {
    %c0_i32 = arith.constant 0 : i32
    %c0_i32_0 = arith.constant 0 : i32
    %c0_i32_1 = arith.constant 0 : i32
    %c0_i32_2 = arith.constant 0 : i32
    return %arg1, %c0_i32, %c0_i32_0, %c0_i32_1 : i32, i32, i32, i32
  }
  func.func @transform_14(%arg0: i32, %arg1: i32) -> (i32, i32, i32) {
    %c0_i32 = arith.constant 0 : i32
    %c0_i32_0 = arith.constant 0 : i32
    %c0_i32_1 = arith.constant 0 : i32
    return %arg1, %c0_i32, %c0_i32_0 : i32, i32, i32
  }
  func.func @transform_15(%arg0: i32, %arg1: i32) -> (i32, i32, i32) {
    %c0_i32 = arith.constant 0 : i32
    %c0_i32_0 = arith.constant 0 : i32
    %c0_i32_1 = arith.constant 0 : i32
    return %arg1, %c0_i32, %c0_i32_0 : i32, i32, i32
  }
  func.func @transform_16(%arg0: i32, %arg1: i32) -> (i32, i32, i32) {
    %c0_i32 = arith.constant 0 : i32
    %c0_i32_0 = arith.constant 0 : i32
    %c0_i32_1 = arith.constant 0 : i32
    return %arg1, %c0_i32, %c0_i32_0 : i32, i32, i32
  }
  func.func @transform_17(%arg0: i32, %arg1: i32) -> (i32, i32) {
    %c0_i32 = arith.constant 0 : i32
    %c0_i32_0 = arith.constant 0 : i32
    %c0_i32_1 = arith.constant 0 : i32
    return %c0_i32, %c0_i32_0 : i32, i32
  }
  func.func @transform_18(%arg0: i32, %arg1: i32) -> (i32, i32) {
    %c0_i32 = arith.constant 0 : i32
    %c0_i32_0 = arith.constant 0 : i32
    %c0_i32_1 = arith.constant 0 : i32
    return %c0_i32, %c0_i32_0 : i32, i32
  }
  func.func @transform_19(%arg0: i32, %arg1: i32) -> (i32, i32, i32) {
    %c0_i32 = arith.constant 0 : i32
    %c0_i32_0 = arith.constant 0 : i32
    %c0_i32_1 = arith.constant 0 : i32
    return %arg0, %c0_i32, %c0_i32_0 : i32, i32, i32
  }
}

</mosaic_0001>

<bundles_post_ra>
// kernel: _lambda_.2
= control target key start
LH: loop header
LB: loop body
LE: loop exit
PB: predicated region body
PF: predicated region fallthrough
CT: control target
= control target key end

     0   :  { %vm71_vm0 = vcmask 1041408   ;;  %vm67_vm1 = vcmask 31744   ;;  %v133_v15 = vlaneseq  ;;  %vm248_vm2 = vcmask 261120   ;;  %s1219_s0 = inlined_call_operand.vmem [shape: f32[2,4,16], index: 0, kind: input, shape index: {}]   ;;  %s1220_s1 = inlined_call_operand.vmem [shape: bf16[4,32], index: 1, kind: input, shape index: {}]   ;;  %s1221_s2 = inlined_call_operand.vmem [shape: f32[1,32], index: 2, kind: input, shape index: {}]   ;;  %s1222_s3 = inlined_call_operand.vmem [shape: bf16[3,32,32], index: 3, kind: input, shape index: {}]   ;;  %s1223_s4 = inlined_call_operand.vmem [shape: f32[1,32], index: 4, kind: input, shape index: {}]   ;;  %s1224_s5 = inlined_call_operand.vmem [shape: f32[1,32], index: 5, kind: input, shape index: {}]   ;;  %s1225_s6 = inlined_call_operand.vmem [shape: f32[1,32], index: 6, kind: input, shape index: {}]   ;;  %s1226_s7 = inlined_call_operand.vmem [shape: bf16[3,32,32], index: 7, kind: input, shape index: {}]   ;;  %s1227_s8 = inlined_call_operand.vmem [shape: f32[1,32], index: 8, kind: input, shape index: {}]   ;;  %s1228_s9 = inlined_call_operand.vmem [shape: f32[1,32], index: 9, kind: input, shape index: {}]   ;;  %s1229_s10 = inlined_call_operand.vmem [shape: f32[1,32], index: 10, kind: input, shape index: {}]   ;;  %s1230_s11 = inlined_call_operand.vmem [shape: f32[1,32], index: 11, kind: input, shape index: {}]   ;;  %s1231_s12 = inlined_call_operand.vmem [shape: f32[1,32], index: 12, kind: input, shape index: {}]   ;;  %s1232_s13 = inlined_call_operand.vmem [shape: f32[16,32], index: 13, kind: input, shape index: {}]   ;;  %s1233_s14 = inlined_call_operand.vmem [shape: bf16[2,16,32], index: 14, kind: output, shape index: {}]  }
   0x1   :  { %v49_v0 = vld [vmem:[%s1219_s0] sm:$0xf]  ;;  %v814_v4 = vld [vmem:[%s1219_s0 + $0x4] sm:$0xf]  ;;  %v897_v6 = vld [vmem:[%s1222_s3 + $0x18] sm:$0xff] }
   0x2   :  { %v48_v1 = vld [vmem:[%s1220_s1] sm:$0x3]  ;;  %v50_v2 = vpack.c.bf16 %v49_v0, %v49_v0  ;;  %v91_v5 = vpack.c.bf16 %v814_v4, %v814_v4  ;;  %906 = vmatpush.bf16.msra.mxu2 %v897_v6  ;;  %v896_v9 = vld [vmem:[%s1222_s3 + $0x10] sm:$0xff]  ;;  %v899_v10 = vld [vmem:[%s1222_s3 + $0x28] sm:$0xff]  ;;  %v1031_v17 = vshrl.u32 %v133_v15, 7 }
   0x3   :  { %v73_v3 = vsel %vm71_vm0, %v48_v1, 0  ;;  %v898_v11 = vld [vmem:[%s1222_s3 + $0x20] sm:$0xff]  ;;  %v895_v12 = vld [vmem:[%s1222_s3 + $0x8] sm:$0xff] }
   0x4   :  { %82 = vmatpush.bf16.msra.mxu0 %v73_v3  ;;  %118 = vmatpush.bf16.msra.mxu1 %v73_v3  ;;  %v894_v13 = vld [vmem:[%s1222_s3] sm:$0xff]  ;;  %v135_v21 = vadd.s32 8, %v1031_v17  ;;  %v136_v24 = vadd.s32 16, %v1031_v17  ;;  %v142_v29 = vand.u32 15, %v1031_v17  ;;  %vm315_vm3 = vcmp.lt.s32.totalorder %v1031_v17, 7 }
   0x5   :  { %51 = vxpose.xlu0.c.b16.start.end [1/1] (short) (narrow) %v50_v2, 16  ;;  %908 = vmatpush.bf16.msra.mxu3 %v895_v12  ;;  %v911_v16 = vld [vmem:[%s1221_s2] ss:$0 sm:$0xff]  ;;  %vm190_vm5 = vcmp.lt.s32.totalorder %v1031_v17, 1  ;;  %v137_v41 = vadd.s32 24, %v1031_v17 }
   0x6   :  { %907 = vmatpush.bf16.msra.mxu2 %v896_v9  ;;  %v149_v23 = vand.u32 15, %v135_v21  ;;  %v156_v28 = vand.u32 15, %v136_v24  ;;  %v1045_v35 = vadd.s32 4294967295, %v142_v29 }
   0x7   :  { %v163_v51 = vand.u32 15, %v137_v41 }
   0x8   :  { %261 = vmatpush.bf16.msrb.mxu0 %v897_v6  ;;  %298 = vmatpush.bf16.msrb.mxu1 %v895_v12  ;;  %v1036_v27 = vadd.s32 1, %v149_v23  ;;  %v1043_v34 = vadd.s32 4294967295, %v156_v28  ;;  %vm199_vm7 = vcmp.ge.s32.totalorder %v1045_v35, 0 }
   0x9   :  { %909 = vmatpush.bf16.msra.mxu3 %v894_v13  ;;  %v1071_v57 = vadd.s32 1, %v163_v51 }
   0xa   :  { %vm329_vm4 = vcmp.lt.s32.totalorder %v1036_v27, 16  ;;  %vm201_vm6 = vcmp.ge.s32.totalorder %v1043_v34, 0 }
   0xb   :  { %vm331_vm8 = vcmp.lt.s32.totalorder %v1071_v57, 16  ;;  %v915_v57 = vld [vmem:[%s1227_s8] ss:$0 sm:$0xff] }
   0xc   :  { %262 = vmatpush.bf16.msrb.mxu0 %v896_v9  ;;  %299 = vmatpush.bf16.msrb.mxu1 %v894_v13 }
  0x15   :  { %92 = vxpose.xlu0.c.b16.start.end [1/1] (short) (narrow) %v91_v5, 16 }
  0xb1   :  { %v59_v7 = vpop.trf.xlu0 }
  0xb2   :  { %813 = vmatmul.msk.bf16.vlgmr.msra.gmra.mxu0 %vm67_vm1, %v59_v7 }
  0xb3   :  { %379 = vmatpush.bf16.msra.mxu0 %v899_v10 }
  0xb7   :  { %380 = vmatpush.bf16.msra.mxu0 %v898_v11 }
  0xc1   :  { %v100_v8 = vpop.trf.xlu0 }
  0xc2   :  { %815 = vmatmul.msk.bf16.vlgmr.msra.gmra.mxu1 %vm67_vm1, %v100_v8  ;;  %v912_v8 = vld [vmem:[%s1223_s4] ss:$0 sm:$0xff] }
 0x12f   :  { %v84_v14 = vpop.f32.mrf.mxu0 }
 0x130   :  { %v129_v19 = vadd.f32 %v911_v16, %v84_v14 }
 0x132   :  { %v311_v36 = vrot.slane %v129_v19, 1  ;;  %v186_v44 = vrot.slane %v129_v19, 7 }
 0x137   :  { %v86_v18 = vpop.f32.mrf.mxu0 }
 0x138   :  { %v130_v20 = vadd.f32 %v911_v16, %v86_v18 }
 0x13a   :  { %v229_v22 = vpack.c.bf16 %v130_v20, %v129_v19  ;;  %v312_v30 = vrot.slane %v130_v20, 1  ;;  %v187_v37 = vrot.slane %v130_v20, 7 }
 0x13c   :  { %828 = vmatmul.msk.bf16.vlgmr.msrb.gmra.mxu0 %vm248_vm2, %v229_v22  ;;  %v318_v42 = vsel %vm315_vm3, %v311_v36, %v312_v30  ;;  %v193_v53 = vsel %vm190_vm5, %v186_v44, %v187_v37 }
 0x13f   :  { %v120_v25 = vpop.f32.mrf.mxu1 }
 0x140   :  { %v131_v26 = vadd.f32 %v911_v16, %v120_v25 }
 0x142   :  { %v313_v31 = vrot.slane %v131_v26, 1  ;;  %v188_v33 = vrot.slane %v131_v26, 7 }
 0x144   :  { %v317_v32 = vsel %vm315_vm3, %v312_v30, %v313_v31  ;;  %v192_v43 = vsel %vm190_vm5, %v187_v37, %v188_v33 }
 0x145   :  { %v345_v38 = vsel %vm329_vm4, %v317_v32, 0.0  ;;  %v221_v49 = vsel %vm201_vm6, %v192_v43, 0.0 }
 0x146   :  { %v348_v45 = vpack.c.bf16 %v345_v38, %v318_v42 }
 0x147   :  { %v122_v39 = vpop.f32.mrf.mxu1 }
 0x148   :  { %v132_v40 = vadd.f32 %v911_v16, %v122_v39 }
 0x14a   :  { %v189_v46 = vrot.slane %v132_v40, 7  ;;  %v230_v47 = vpack.c.bf16 %v132_v40, %v131_v26  ;;  %v314_v56 = vrot.slane %v132_v40, 1 }
 0x14c   :  { %829 = vmatmul.msk.bf16.vlgmr.msra.gmra.mxu2 %vm248_vm2, %v230_v47  ;;  %852 = vmatmul.msk.bf16.vlgmr.msra.gmra.mxu0 %vm248_vm2, %v348_v45  ;;  %v191_v48 = vsel %vm190_vm5, %v188_v33, %v189_v46  ;;  %v194_v50 = vsel %vm190_vm5, %v189_v46, %v186_v44  ;;  %v319_v58 = vsel %vm315_vm3, %v314_v56, %v311_v36 }
 0x14d   :  { %v224_v52 = vpack.c.bf16 %v191_v48, %v221_v49  ;;  %v219_v54 = vsel %vm199_vm7, %v194_v50, 0.0  ;;  %v316_v59 = vsel %vm315_vm3, %v313_v31, %v314_v56  ;;  %v347_v60 = vsel %vm331_vm8, %v319_v58, 0.0  ;;  %v903_v56 = vld [vmem:[%s1226_s7 + $0x18] sm:$0xff] }
 0x14e   :  { %v223_v55 = vpack.c.bf16 %v193_v53, %v219_v54  ;;  %v349_v61 = vpack.c.bf16 %v347_v60, %v316_v59  ;;  %527 = vmatpush.bf16.msra.mxu1 %v903_v56 }
 0x14f   :  { %839 = vmatmul.msk.bf16.vlgmr.msra.gmra.mxu3 %vm248_vm2, %v224_v52 }
 0x150   :  { %838 = vmatmul.msk.bf16.vlgmr.msrb.gmra.mxu1 %vm248_vm2, %v223_v55 }
 0x15c   :  { %853 = vmatmul.msk.bf16.gmra.mxu0 %vm248_vm2, %v349_v61 }
 0x1b9   :  { %v264_v62 = vpop.f32.mrf.mxu0 }
 0x1c1   :  { %v266_v63 = vpop.f32.mrf.mxu0 }
 0x1c9   :  { %v382_v0 = vpop.f32.mrf.mxu0 }
 0x1cd   :  { %v301_v1 = vpop.f32.mrf.mxu1 }
 0x1ce   :  { %v302_v3 = vadd.f32 %v301_v1, %v264_v62  ;;  %v901_v62 = vld [vmem:[%s1226_s7 + $0x8] sm:$0xff] }
 0x1cf   :  { %v269_v5 = vpop.f32.mrf.mxu2  ;;  %564 = vmatpush.bf16.msrb.mxu2 %v901_v62 }
 0x1d0   :  { %v392_v7 = vadd.f32 %v382_v0, %v302_v3  ;;  %v902_v0 = vld [vmem:[%s1226_s7 + $0x10] sm:$0xff]  ;;  %v904_v3 = vld [vmem:[%s1226_s7 + $0x20] sm:$0xff] }
 0x1d1   :  { %v384_v2 = vpop.f32.mrf.mxu0  ;;  %528 = vmatpush.bf16.msra.mxu1 %v902_v0 }
 0x1d2   :  { %v306_v4 = vpop.f32.mrf.mxu3  ;;  %v1084_v13 = vadd.f32 %v912_v8, %v392_v7 }
 0x1d3   :  { %v307_v10 = vadd.f32 %v306_v4, %v269_v5 }
 0x1d4   :  { %v419_v20 = vmul.f32 %v1084_v13, %v1084_v13  ;;  %v406_v23 = vsel %vm248_vm2, %v1084_v13, 0.0 }
 0x1d5   :  { %v303_v6 = vpop.f32.mrf.mxu1 }
 0x1d6   :  { %v304_v9 = vadd.f32 %v303_v6, %v266_v63  ;;  %v423_v30 = vsel %vm248_vm2, %v419_v20, 0.0  ;;  %v905_v63 = vld [vmem:[%s1226_s7 + $0x28] sm:$0xff]  ;;  %v913_v20 = vld [vmem:[%s1224_s5] ss:$0 sm:$0xff] }
 0x1d7   :  { %v271_v22 = vpop.f32.mrf.mxu2  ;;  %620 = vmatpush.bf16.msrb.mxu3 %v905_v63 }
 0x1d8   :  { %v393_v11 = vadd.f32 %v384_v2, %v304_v9  ;;  %v900_v2 = vld [vmem:[%s1226_s7] sm:$0xff] }
 0x1d9   :  { %v387_v12 = vpop.f32.mrf.mxu0  ;;  %565 = vmatpush.bf16.msrb.mxu2 %v900_v2 }
 0x1da   :  { %v1086_v14 = vadd.f32 %v912_v8, %v393_v11  ;;  %v394_v15 = vadd.f32 %v387_v12, %v307_v10  ;;  %v308_v19 = vpop.f32.mrf.mxu3 }
 0x1db   :  { %v309_v26 = vadd.f32 %v308_v19, %v271_v22  ;;  %621 = vmatpush.bf16.msrb.mxu3 %v904_v3 }
 0x1dc   :  { %v420_v16 = vmul.f32 %v1086_v14, %v1086_v14  ;;  %v1090_v18 = vadd.f32 %v912_v8, %v394_v15  ;;  %v407_v21 = vsel %vm248_vm2, %v1086_v14, 0.0 }
 0x1dd   :  { %v408_v28 = vadd.f32 %v407_v21, %v406_v23 }
 0x1de   :  { %v424_v24 = vsel %vm248_vm2, %v420_v16, 0.0  ;;  %v421_v25 = vmul.f32 %v1090_v18, %v1090_v18  ;;  %v409_v31 = vsel %vm248_vm2, %v1090_v18, 0.0 }
 0x1df   :  { %v425_v33 = vadd.f32 %v424_v24, %v423_v30  ;;  %v410_v38 = vadd.f32 %v409_v31, %v408_v28 }
 0x1e0   :  { %v426_v36 = vsel %vm248_vm2, %v421_v25, 0.0 }
 0x1e1   :  { %v389_v29 = vpop.f32.mrf.mxu0  ;;  %v427_v41 = vadd.f32 %v426_v36, %v425_v33 }
 0x1e2   :  { %v395_v32 = vadd.f32 %v389_v29, %v309_v26  ;;  %v914_v26 = vld [vmem:[%s1225_s6] ss:$0 sm:$0xff] }
 0x1e4   :  { %v403_v37 = vadd.f32 %v912_v8, %v395_v32 }
 0x1e6   :  { %v411_v39 = vsel %vm248_vm2, %v403_v37, 0.0  ;;  %v422_v40 = vmul.f32 %v403_v37, %v403_v37 }
 0x1e7   :  { %v412_v42 = vadd.f32 %v411_v39, %v410_v38 }
 0x1e8   :  { %v428_v43 = vsel %vm248_vm2, %v422_v40, 0.0 }
 0x1e9   :  { %v413_v44 = vrot.slane %v412_v42, 4  ;;  %v429_v45 = vadd.f32 %v428_v43, %v427_v41 }
 0x1eb   :  { %v414_v46 = vadd.f32 %v413_v44, %v412_v42  ;;  %v430_v47 = vrot.slane %v429_v45, 4 }
 0x1ed   :  { %v415_v48 = vrot.slane %v414_v46, 2  ;;  %v431_v49 = vadd.f32 %v430_v47, %v429_v45 }
 0x1ef   :  { %v416_v50 = vadd.f32 %v415_v48, %v414_v46  ;;  %v432_v51 = vrot.slane %v431_v49, 2 }
 0x1f1   :  { %v417_v52 = vrot.slane %v416_v50, 1  ;;  %v433_v53 = vadd.f32 %v432_v51, %v431_v49 }
 0x1f3   :  { %v418_v54 = vadd.f32 %v417_v52, %v416_v50  ;;  %v434_v55 = vrot.slane %v433_v53, 1 }
 0x1f5   :  { %v435_v58 = vadd.f32 %v434_v55, %v433_v53  ;;  %v436_v59 = vmul.f32 0.03125, %v418_v54 }
 0x1f7   :  { %v437_v60 = vmul.f32 0.03125, %v435_v58  ;;  %v438_v61 = vmul.f32 %v436_v59, %v436_v59  ;;  %v441_v12 = vsub.f32 %v1084_v13, %v436_v59  ;;  %v442_v15 = vsub.f32 %v1086_v14, %v436_v59 }
 0x1f8   :  { %v443_v16 = vsub.f32 %v1090_v18, %v436_v59  ;;  %v444_v19 = vsub.f32 %v403_v37, %v436_v59 }
 0x1f9   :  { %v439_v1 = vsub.f32 %v437_v60, %v438_v61 }
 0x1fb   :  { %v440_v4 = vmax.f32 %v439_v1, 0.0 }
 0x1fd   :  { %v445_v5 = vadd.f32 1e-05, %v440_v4 }
 0x1ff   :  { %920 = vrsqrt.f32 %v445_v5  ;;  %vm452_vm10 = vweird.f32 %v445_v5 }
 0x205   :  { %v921_v6 = vpop.eup %920 }
 0x206   :  { %v447_v7 = vmul.f32 %v921_v6, %v445_v5  ;;  %vm453_vm9 = vweird.f32 %v921_v6 }
 0x207   :  { %vm454_vm11 = vmor %vm452_vm10, %vm453_vm9 }
 0x208   :  { %v448_v8 = vmul.f32 %v921_v6, %v447_v7 }
 0x20a   :  { %v449_v9 = vmul.f32 0.5, %v448_v8 }
 0x20c   :  { %v450_v10 = vsub.f32 1.5, %v449_v9 }
 0x20e   :  { %v451_v11 = vmul.f32 %v921_v6, %v450_v10 }
 0x210   :  { %v455_v21 = vsel %vm454_vm11, %v921_v6, %v451_v11 }
 0x211   :  { %v456_v22 = vmul.f32 %v455_v21, %v441_v12  ;;  %v457_v23 = vmul.f32 %v455_v21, %v442_v15  ;;  %v458_v24 = vmul.f32 %v455_v21, %v443_v16  ;;  %v459_v25 = vmul.f32 %v455_v21, %v444_v19 }
 0x213   :  { %v465_v13 = vmul.f32 %v913_v20, %v458_v24  ;;  %v466_v28 = vmul.f32 %v913_v20, %v459_v25  ;;  %v463_v14 = vmul.f32 %v913_v20, %v456_v22  ;;  %v464_v29 = vmul.f32 %v913_v20, %v457_v23 }
 0x215   :  { %v473_v18 = vadd.f32 %v914_v26, %v466_v28  ;;  %v470_v30 = vadd.f32 %v914_v26, %v463_v14  ;;  %v471_v31 = vadd.f32 %v914_v26, %v464_v29  ;;  %v472_v32 = vadd.f32 %v914_v26, %v465_v13 }
 0x217   :  { %v477_v33 = vmax.f32 %v473_v18, 0.0  ;;  %v474_v36 = vmax.f32 %v470_v30, 0.0  ;;  %v475_v37 = vmax.f32 %v471_v31, 0.0  ;;  %v476_v38 = vmax.f32 %v472_v32, 0.0 }
 0x219   :  { %v496_v39 = vpack.c.bf16 %v475_v37, %v474_v36  ;;  %v478_v40 = vrot.slane %v474_v36, 7  ;;  %v479_v41 = vrot.slane %v475_v37, 7  ;;  %v481_v42 = vrot.slane %v477_v33, 7 }
 0x21a   :  { %v577_v43 = vrot.slane %v474_v36, 1  ;;  %v578_v44 = vrot.slane %v475_v37, 1  ;;  %v579_v45 = vrot.slane %v476_v38, 1  ;;  %v480_v54 = vrot.slane %v476_v38, 7 }
 0x21b   :  { %866 = vmatmul.msk.bf16.vlgmr.msra.gmra.mxu1 %vm248_vm2, %v496_v39  ;;  %v484_v46 = vsel %vm190_vm5, %v478_v40, %v479_v41  ;;  %v485_v47 = vsel %vm190_vm5, %v481_v42, %v478_v40  ;;  %v580_v55 = vrot.slane %v477_v33, 1  ;;  %v497_v58 = vpack.c.bf16 %v477_v33, %v476_v38 }
 0x21c   :  { %v486_v48 = vsel %vm199_vm7, %v485_v47, 0.0  ;;  %v582_v49 = vsel %vm315_vm3, %v578_v44, %v579_v45  ;;  %v583_v50 = vsel %vm315_vm3, %v577_v43, %v578_v44  ;;  %v483_v35 = vsel %vm190_vm5, %v479_v41, %v480_v54 }
 0x21d   :  { %v490_v51 = vpack.c.bf16 %v484_v46, %v486_v48  ;;  %v586_v52 = vsel %vm329_vm4, %v582_v49, 0.0  ;;  %v584_v56 = vsel %vm315_vm3, %v580_v55, %v577_v43  ;;  %v482_v59 = vsel %vm190_vm5, %v480_v54, %v481_v42 }
 0x21e   :  { %v589_v53 = vpack.c.bf16 %v586_v52, %v583_v50  ;;  %v488_v27 = vsel %vm201_vm6, %v483_v35, 0.0  ;;  %v581_v60 = vsel %vm315_vm3, %v579_v45, %v580_v55  ;;  %v588_v61 = vsel %vm331_vm8, %v584_v56, 0.0 }
 0x21f   :  { %876 = vmatmul.msk.bf16.vlgmr.msrb.gmra.mxu2 %vm248_vm2, %v490_v51  ;;  %v491_v62 = vpack.c.bf16 %v482_v59, %v488_v27  ;;  %v590_v63 = vpack.c.bf16 %v588_v61, %v581_v60 }
 0x220   :  { %890 = vmatmul.msk.bf16.vlgmr.msrb.gmra.mxu3 %vm248_vm2, %v589_v53 }
 0x22b   :  { %867 = vmatmul.msk.bf16.gmra.mxu1 %vm248_vm2, %v497_v58 }
 0x22f   :  { %877 = vmatmul.msk.bf16.gmra.mxu2 %vm248_vm2, %v491_v62 }
 0x230   :  { %891 = vmatmul.msk.bf16.gmra.mxu3 %vm248_vm2, %v590_v63 }
 0x298   :  { %v530_v0 = vpop.f32.mrf.mxu1 }
 0x2a0   :  { %v532_v3 = vpop.f32.mrf.mxu1 }
 0x2a2   :  { %v567_v1 = vpop.f32.mrf.mxu2 }
 0x2a3   :  { %v623_v2 = vpop.f32.mrf.mxu3  ;;  %v568_v6 = vadd.f32 %v567_v1, %v530_v0 }
 0x2a5   :  { %v633_v9 = vadd.f32 %v623_v2, %v568_v6  ;;  %v916_v6 = vld [vmem:[%s1228_s9] ss:$0 sm:$0xff] }
 0x2a7   :  { %v641_v16 = vadd.f32 %v915_v57, %v633_v9 }
 0x2a8   :  { %v535_v7 = vpop.f32.mrf.mxu1 }
 0x2a9   :  { %v660_v23 = vmul.f32 %v641_v16, %v641_v16  ;;  %v647_v28 = vsel %vm248_vm2, %v641_v16, 0.0 }
 0x2aa   :  { %v569_v34 = vpop.f32.mrf.mxu2 }
 0x2ab   :  { %v625_v4 = vpop.f32.mrf.mxu3  ;;  %v570_v5 = vadd.f32 %v569_v34, %v532_v3  ;;  %v664_v31 = vsel %vm248_vm2, %v660_v23, 0.0 }
 0x2ad   :  { %v634_v17 = vadd.f32 %v625_v4, %v570_v5 }
 0x2af   :  { %v1167_v12 = vadd.f32 %v915_v57, %v634_v17 }
 0x2b0   :  { %v537_v21 = vpop.f32.mrf.mxu1 }
 0x2b1   :  { %v661_v20 = vmul.f32 %v1167_v12, %v1167_v12  ;;  %v648_v24 = vsel %vm248_vm2, %v1167_v12, 0.0 }
 0x2b2   :  { %v572_v8 = vpop.f32.mrf.mxu2  ;;  %v649_v30 = vadd.f32 %v648_v24, %v647_v28 }
 0x2b3   :  { %v573_v10 = vadd.f32 %v572_v8, %v535_v7  ;;  %v628_v11 = vpop.f32.mrf.mxu3  ;;  %v665_v14 = vsel %vm248_vm2, %v661_v20, 0.0 }
 0x2b4   :  { %v666_v36 = vadd.f32 %v665_v14, %v664_v31 }
 0x2b5   :  { %v635_v15 = vadd.f32 %v628_v11, %v573_v10  ;;  %v917_v10 = vld [vmem:[%s1229_s10] ss:$0 sm:$0xff] }
 0x2b7   :  { %v643_v19 = vadd.f32 %v915_v57, %v635_v15 }
 0x2b9   :  { %v662_v25 = vmul.f32 %v643_v19, %v643_v19  ;;  %v650_v29 = vsel %vm248_vm2, %v643_v19, 0.0 }
 0x2ba   :  { %v574_v22 = vpop.f32.mrf.mxu2  ;;  %v651_v37 = vadd.f32 %v650_v29, %v649_v30 }
 0x2bb   :  { %v575_v26 = vadd.f32 %v574_v22, %v537_v21  ;;  %v630_v13 = vpop.f32.mrf.mxu3  ;;  %v667_v32 = vsel %vm248_vm2, %v662_v25, 0.0 }
 0x2bc   :  { %v668_v40 = vadd.f32 %v667_v32, %v666_v36 }
 0x2bd   :  { %v636_v18 = vadd.f32 %v630_v13, %v575_v26 }
 0x2bf   :  { %v644_v33 = vadd.f32 %v915_v57, %v636_v18 }
 0x2c1   :  { %v652_v38 = vsel %vm248_vm2, %v644_v33, 0.0  ;;  %v663_v39 = vmul.f32 %v644_v33, %v644_v33 }
 0x2c2   :  { %v653_v41 = vadd.f32 %v652_v38, %v651_v37 }
 0x2c3   :  { %v669_v42 = vsel %vm248_vm2, %v663_v39, 0.0 }
 0x2c4   :  { %v654_v43 = vrot.slane %v653_v41, 4  ;;  %v670_v44 = vadd.f32 %v669_v42, %v668_v40 }
 0x2c6   :  { %v655_v45 = vadd.f32 %v654_v43, %v653_v41  ;;  %v671_v46 = vrot.slane %v670_v44, 4 }
 0x2c8   :  { %v656_v47 = vrot.slane %v655_v45, 2  ;;  %v672_v48 = vadd.f32 %v671_v46, %v670_v44 }
 0x2ca   :  { %v657_v49 = vadd.f32 %v656_v47, %v655_v45  ;;  %v673_v50 = vrot.slane %v672_v48, 2 }
 0x2cc   :  { %v658_v51 = vrot.slane %v657_v49, 1  ;;  %v674_v52 = vadd.f32 %v673_v50, %v672_v48 }
 0x2ce   :  { %v659_v53 = vadd.f32 %v658_v51, %v657_v49  ;;  %v675_v54 = vrot.slane %v674_v52, 1 }
 0x2d0   :  { %v676_v55 = vadd.f32 %v675_v54, %v674_v52  ;;  %v677_v35 = vmul.f32 0.03125, %v659_v53 }
 0x2d2   :  { %v678_v56 = vmul.f32 0.03125, %v676_v55  ;;  %v679_v58 = vmul.f32 %v677_v35, %v677_v35  ;;  %v682_v3 = vsub.f32 %v641_v16, %v677_v35  ;;  %v683_v34 = vsub.f32 %v1167_v12, %v677_v35 }
 0x2d3   :  { %v684_v4 = vsub.f32 %v643_v19, %v677_v35  ;;  %v685_v5 = vsub.f32 %v644_v33, %v677_v35 }
 0x2d4   :  { %v680_v59 = vsub.f32 %v678_v56, %v679_v58 }
 0x2d6   :  { %v681_v27 = vmax.f32 %v680_v59, 0.0 }
 0x2d8   :  { %v686_v60 = vadd.f32 1e-05, %v681_v27 }
 0x2da   :  { %922 = vrsqrt.f32 %v686_v60  ;;  %vm693_vm13 = vweird.f32 %v686_v60 }
 0x2e0   :  { %v923_v61 = vpop.eup %922 }
 0x2e1   :  { %v688_v62 = vmul.f32 %v923_v61, %v686_v60  ;;  %vm694_vm12 = vweird.f32 %v923_v61 }
 0x2e2   :  { %vm695_vm14 = vmor %vm693_vm13, %vm694_vm12 }
 0x2e3   :  { %v689_v63 = vmul.f32 %v923_v61, %v688_v62 }
 0x2e5   :  { %v690_v0 = vmul.f32 0.5, %v689_v63 }
 0x2e7   :  { %v691_v1 = vsub.f32 1.5, %v690_v0 }
 0x2e9   :  { %v692_v2 = vmul.f32 %v923_v61, %v691_v1 }
 0x2eb   :  { %v696_v7 = vsel %vm695_vm14, %v923_v61, %v692_v2 }
 0x2ec   :  { %v697_v17 = vmul.f32 %v696_v7, %v682_v3  ;;  %v698_v8 = vmul.f32 %v696_v7, %v683_v34  ;;  %v699_v9 = vmul.f32 %v696_v7, %v684_v4  ;;  %v700_v57 = vmul.f32 %v696_v7, %v685_v5 }
 0x2ee   :  { %v704_v11 = vmul.f32 %v916_v6, %v697_v17  ;;  %v705_v15 = vmul.f32 %v916_v6, %v698_v8  ;;  %v706_v16 = vmul.f32 %v916_v6, %v699_v9  ;;  %v707_v12 = vmul.f32 %v916_v6, %v700_v57  ;;  %v918_v57 = vld [vmem:[%s1230_s11] ss:$0 sm:$0xff] }
 0x2f0   :  { %v711_v19 = vadd.f32 %v917_v10, %v704_v11  ;;  %v712_v20 = vadd.f32 %v917_v10, %v705_v15  ;;  %v713_v21 = vadd.f32 %v917_v10, %v706_v16  ;;  %v714_v22 = vadd.f32 %v917_v10, %v707_v12 }
 0x2f2   :  { %v715_v23 = vmax.f32 %v711_v19, 0.0  ;;  %v716_v24 = vmax.f32 %v712_v20, 0.0  ;;  %v717_v25 = vmax.f32 %v713_v21, 0.0  ;;  %v718_v26 = vmax.f32 %v714_v22, 0.0  ;;  %v919_v19 = vld [vmem:[%s1231_s12] ss:$0 sm:$0xff] }
 0x2f4   :  { %v719_v13 = vmax.f32 %v715_v23, 0.0  ;;  %v720_v28 = vmax.f32 %v716_v24, 0.0  ;;  %v721_v14 = vmax.f32 %v717_v25, 0.0  ;;  %v722_v29 = vmax.f32 %v718_v26, 0.0  ;;  %v793_v24 = vld [vmem:[%s1232_s13] sm:$0xff]  ;;  %v794_v25 = vld [vmem:[%s1232_s13 + $0x8] sm:$0xff] }
 0x2f6   :  { %v725_v18 = vsel %vm248_vm2, %v719_v13, 0.0  ;;  %v726_v30 = vsel %vm248_vm2, %v720_v28, 0.0  ;;  %v738_v32 = vmul.f32 %v719_v13, %v719_v13  ;;  %v739_v33 = vmul.f32 %v720_v28, %v720_v28 }
 0x2f7   :  { %v727_v31 = vadd.f32 %v726_v30, %v725_v18  ;;  %v740_v36 = vmul.f32 %v721_v14, %v721_v14  ;;  %v728_v37 = vsel %vm248_vm2, %v721_v14, 0.0  ;;  %v741_v39 = vmul.f32 %v722_v29, %v722_v29 }
 0x2f8   :  { %v742_v40 = vsel %vm248_vm2, %v738_v32, 0.0  ;;  %v743_v41 = vsel %vm248_vm2, %v739_v33, 0.0  ;;  %v730_v42 = vsel %vm248_vm2, %v722_v29, 0.0 }
 0x2f9   :  { %v729_v38 = vadd.f32 %v728_v37, %v727_v31  ;;  %v744_v43 = vadd.f32 %v743_v41, %v742_v40  ;;  %v745_v45 = vsel %vm248_vm2, %v740_v36, 0.0  ;;  %v747_v48 = vsel %vm248_vm2, %v741_v39, 0.0 }
 0x2fa   :  { %vm799_vm2 = vcmask 257024  }
 0x2fb   :  { %v731_v44 = vadd.f32 %v730_v42, %v729_v38  ;;  %v746_v46 = vadd.f32 %v745_v45, %v744_v43 }
 0x2fd   :  { %v732_v47 = vrot.slane %v731_v44, 4  ;;  %v748_v49 = vadd.f32 %v747_v48, %v746_v46 }
 0x2ff   :  { %v733_v50 = vadd.f32 %v732_v47, %v731_v44  ;;  %v749_v51 = vrot.slane %v748_v49, 4 }
 0x301   :  { %v734_v52 = vrot.slane %v733_v50, 2  ;;  %v750_v53 = vadd.f32 %v749_v51, %v748_v49 }
 0x303   :  { %v735_v54 = vadd.f32 %v734_v52, %v733_v50  ;;  %v751_v55 = vrot.slane %v750_v53, 2 }
 0x305   :  { %v736_v35 = vrot.slane %v735_v54, 1  ;;  %v752_v56 = vadd.f32 %v751_v55, %v750_v53 }
 0x307   :  { %v737_v58 = vadd.f32 %v736_v35, %v735_v54  ;;  %v753_v59 = vrot.slane %v752_v56, 1 }
 0x309   :  { %v755_v27 = vmul.f32 0.03125, %v737_v58  ;;  %v754_v60 = vadd.f32 %v753_v59, %v752_v56 }
 0x30b   :  { %v757_v61 = vmul.f32 %v755_v27, %v755_v27  ;;  %v756_v62 = vmul.f32 0.03125, %v754_v60  ;;  %v760_v7 = vsub.f32 %v719_v13, %v755_v27  ;;  %v761_v17 = vsub.f32 %v720_v28, %v755_v27 }
 0x30c   :  { %v762_v8 = vsub.f32 %v721_v14, %v755_v27  ;;  %v763_v9 = vsub.f32 %v722_v29, %v755_v27 }
 0x30d   :  { %v758_v63 = vsub.f32 %v756_v62, %v757_v61 }
 0x30f   :  { %v759_v0 = vmax.f32 %v758_v63, 0.0 }
 0x311   :  { %v764_v1 = vadd.f32 1e-05, %v759_v0 }
 0x313   :  { %924 = vrsqrt.f32 %v764_v1  ;;  %vm771_vm0 = vweird.f32 %v764_v1 }
 0x319   :  { %v925_v2 = vpop.eup %924 }
 0x31a   :  { %v766_v3 = vmul.f32 %v925_v2, %v764_v1  ;;  %vm772_vm15 = vweird.f32 %v925_v2 }
 0x31b   :  { %vm773_vm1 = vmor %vm771_vm0, %vm772_vm15 }
 0x31c   :  { %v767_v34 = vmul.f32 %v925_v2, %v766_v3 }
 0x31e   :  { %v768_v4 = vmul.f32 0.5, %v767_v34 }
 0x320   :  { %v769_v5 = vsub.f32 1.5, %v768_v4 }
 0x322   :  { %v770_v6 = vmul.f32 %v925_v2, %v769_v5 }
 0x324   :  { %v774_v10 = vsel %vm773_vm1, %v925_v2, %v770_v6 }
 0x325   :  { %v775_v11 = vmul.f32 %v774_v10, %v760_v7  ;;  %v776_v15 = vmul.f32 %v774_v10, %v761_v17  ;;  %v777_v16 = vmul.f32 %v774_v10, %v762_v8  ;;  %v778_v12 = vmul.f32 %v774_v10, %v763_v9 }
 0x327   :  { %v782_v20 = vmul.f32 %v918_v57, %v775_v11  ;;  %v783_v21 = vmul.f32 %v918_v57, %v776_v15  ;;  %v784_v22 = vmul.f32 %v918_v57, %v777_v16  ;;  %v785_v23 = vmul.f32 %v918_v57, %v778_v12 }
 0x329   :  { %v789_v26 = vadd.f32 %v919_v19, %v782_v20  ;;  %v790_v13 = vadd.f32 %v919_v19, %v783_v21  ;;  %v791_v28 = vadd.f32 %v919_v19, %v784_v22  ;;  %v792_v14 = vadd.f32 %v919_v19, %v785_v23 }
 0x32b   :  { %v795_v29 = vadd.f32 %v793_v24, %v789_v26  ;;  %v796_v18 = vadd.f32 %v794_v25, %v790_v13  ;;  %v802_v30 = vadd.f32 %v793_v24, %v791_v28  ;;  %v803_v31 = vadd.f32 %v794_v25, %v792_v14 }
 0x32d   :  { %v797_v32 = vpack.c.bf16 %v795_v29, %v795_v29  ;;  %v798_v33 = vpack.c.bf16 %v796_v18, %v796_v18  ;;  %v804_v36 = vpack.c.bf16 %v802_v30, %v802_v30  ;;  %v805_v37 = vpack.c.bf16 %v803_v31, %v803_v31 }
 0x32f   :  { %800 = vst.msk [vmem:[%s1233_s14] sm:$0xf] %vm799_vm2, %v797_v32 }
 0x330   :  { %801 = vst.msk [vmem:[%s1233_s14 + $0x4] sm:$0xf] %vm799_vm2, %v798_v33 }
 0x331   :  { %892 = vst.msk [vmem:[%s1233_s14 + $0x8] sm:$0xf] %vm799_vm2, %v804_v36 }
 0x332   :  { %893 = vst.msk [vmem:[%s1233_s14 + $0xc] sm:$0xf] %vm799_vm2, %v805_v37 }

// kernel: _lambda_.3
= control target key start
LH: loop header
LB: loop body
LE: loop exit
PB: predicated region body
PF: predicated region fallthrough
CT: control target
= control target key end

     0   :  { %s2500_s30 = smov 0   ;;  %s2502_s20 = smov 0   ;;  %s2829_s0 = inlined_call_operand.vmem [shape: bf16[2,16,32], index: 0, kind: input, shape index: {}]   ;;  %s2830_s1 = inlined_call_operand.vmem [shape: bf16[2,2,32,16], index: 1, kind: input, shape index: {}]   ;;  %s2831_s2 = inlined_call_operand.vmem [shape: bf16[2,2,32,16], index: 2, kind: input, shape index: {}]   ;;  %s2832_s3 = inlined_call_operand.vmem [shape: bf16[2,2,32,16], index: 3, kind: input, shape index: {}]   ;;  %s2833_s4 = inlined_call_operand.vmem [shape: f32[2,2,1,16], index: 4, kind: input, shape index: {}]   ;;  %s2834_s5 = inlined_call_operand.vmem [shape: f32[2,2,1,16], index: 5, kind: input, shape index: {}]   ;;  %s2835_s6 = inlined_call_operand.vmem [shape: f32[2,2,1,16], index: 6, kind: input, shape index: {}]   ;;  %s2836_s7 = inlined_call_operand.vmem [shape: bf16[2,2,16,32], index: 7, kind: input, shape index: {}]   ;;  %s2837_s8 = inlined_call_operand.vmem [shape: f32[2,1,32], index: 8, kind: input, shape index: {}]   ;;  %s2838_s9 = inlined_call_operand.vmem [shape: f32[2,1,32], index: 9, kind: input, shape index: {}]   ;;  %s2839_s10 = inlined_call_operand.vmem [shape: f32[2,1,32], index: 10, kind: input, shape index: {}]   ;;  %s2840_s11 = inlined_call_operand.vmem [shape: bf16[2,3,32,64], index: 11, kind: input, shape index: {}]   ;;  %s2841_s12 = inlined_call_operand.vmem [shape: f32[2,1,64], index: 12, kind: input, shape index: {}]   ;;  %s2842_s13 = inlined_call_operand.vmem [shape: bf16[2,3,64,32], index: 13, kind: input, shape index: {}]   ;;  %s2843_s14 = inlined_call_operand.vmem [shape: f32[2,1,32], index: 14, kind: input, shape index: {}]   ;;  %s2844_s15 = inlined_call_operand.vmem [shape: f32[2,1,32], index: 15, kind: input, shape index: {}]   ;;  %s2845_s16 = inlined_call_operand.vmem [shape: f32[2,1,32], index: 16, kind: input, shape index: {}]   ;;  %s2846_s17 = inlined_call_operand.vmem [shape: bf16[8,32], index: 17, kind: input, shape index: {}]   ;;  %s2847_s18 = inlined_call_operand.vmem [shape: f32[8,1], index: 18, kind: input, shape index: {}]   ;;  %s2848_s19 = inlined_call_operand.vmem [shape: f32[2,8,128], index: 19, kind: output, shape index: {}]  }
   0x1   :  { %2857 = sst [smem:[#allocation13_spill]] %s2829_s0  ;;  %s2498_s0 = smov 0  }
   0x2   :  { %2858 = sst [smem:[#allocation14_spill]] %s2830_s1  ;;  %s2504_s21 = smov 0  }
   0x3   :  { %2859 = sst [smem:[#allocation15_spill]] %s2831_s2  ;;  %s2506_s1 = smov 0  }
   0x4   :  { %2860 = sst [smem:[#allocation16_spill]] %s2832_s3 }
   0x5   :  { %2861 = sst [smem:[#allocation17_spill]] %s2833_s4 }
   0x6   :  { %2862 = sst [smem:[#allocation18_spill]] %s2834_s5 }
   0x7   :  { %2863 = sst [smem:[#allocation19_spill]] %s2835_s6 }
   0x8   :  { %2864 = sst [smem:[#allocation20_spill]] %s2836_s7 }
   0x9   :  { %2865 = sst [smem:[#allocation21_spill]] %s2841_s12 }
   0xa   :  { %2866 = sst [smem:[#allocation22_spill]] %s2843_s14 }
   0xb   :  { %2867 = sst [smem:[#allocation23_spill]] %s2845_s16 }
   0xc   :  { %2868 = sst [smem:[#allocation24_spill]] %s2846_s17 }
   0xd   :  { %2869 = sst [smem:[#allocation25_spill]] %s2847_s18 }
   0xe   :  { %2870 = sst [smem:[#allocation26_spill]] %s2848_s19 }
   0xf LB: > { %2871 = sst [smem:[#allocation3_spill]] %s2378_s0  ;;  %s38_s22 = sadd.s32 1, %s2386_s20  ;;  %s2394_s1 = sphi %s2506_s1, %s29_s1   ;;  %s2390_s21 = sphi %s2504_s21, %s2913_s21   ;;  %s2386_s20 = sphi %s2502_s20, %s2912_s20   ;;  %s2382_s30 = sphi %s2500_s30, %s2911_s30   ;;  %s2378_s0 = sphi %s2498_s0, %s2910_s0  }
  0x10   : > { %2872 = sst [smem:[#allocation4_spill]] %s2386_s20  ;;  %s41_s2 = sadd.s32 1, %s2390_s21 }
  0x11   : > { %2873 = sst [smem:[#allocation5_spill]] %s2390_s21  ;;  %p39_p0 = scmp.ge.s32.totalorder %s38_s22, 2 }
  0x12   : > { %2874 = sst [smem:[#allocation6_spill]] %s2394_s1  ;;  %p2022_p1 = scmp.ge.s32.totalorder %s2394_s1, 1 }
  0x13   : > { %p692_p2 = scmp.lt.s32.totalorder %s2394_s1, 5  ;;  %s2915_s22 = smov (%p39_p0, %s38_s22), 0 }
  0x14   : > { %2875 = sst [smem:[#allocation7_spill]] %s2915_s22  ;;  %s2917_s2 = smov (!%p39_p0, %s41_s2), %s2390_s21 }
  0x15   : > { %p693_p3 = pnand %p2022_p1, %p692_p2  ;;  %p43_p4 = scmp.ge.s32.totalorder %s2917_s2, 2 }
  0x17   : > { %s2919_s2 = smov (%p43_p4, %s2917_s2), 0  ;;  %696 = sbr.rel (%p693_p3) target bundleno = 2038 (0x7f6), region = 96 }
  0x18   : > { %2876 = sst [smem:[#allocation8_spill]] %s2919_s2 }
  0x1c   : > { %p810_p5 = scmp.lt.s32.totalorder %s2382_s30, 1  ;;  %p815_p6 = scmp.lt.s32.totalorder %s2378_s0, 1 }
  0x1d   : > { %s2877_s26 = sld [smem:[#allocation13_spill]] }
  0x1e   : > { %s2921_s30 = smov (!%p810_p5, %s2382_s30), 1  ;;  %s2878_s22 = sld [smem:[#allocation14_spill]] }
  0x1f   : > { %s2532_s23 = scalar_select %p815_p6, %s2378_s0, 1 }
  0x20   : > { %s2231_s24 = sshll.u32 %s2921_s30, 3  ;;  %s2880_s17 = sld [smem:[#allocation15_spill]] }
  0x21   : > { %s2232_s28 = sshll.u32 %s2532_s23, 5  ;;  %s2881_s19 = sld [smem:[#allocation16_spill]] }
  0x22   : > { %s2031_s3 = sshll.u32 %s2532_s23, 1  ;;  %s2883_s4 = sld [smem:[#allocation17_spill]] }
  0x23   : > { %s814_s27 = scalar_lea.vmem %s2877_s26, %s2231_s24  ;;  %s2885_s5 = sld [smem:[#allocation18_spill]] }
  0x24   : > { %s2541_s21 = scalar_lea.vmem %s2878_s22, %s2232_s28  ;;  %s2886_s6 = sld [smem:[#allocation19_spill]] }
  0x25   : > { %2879 = sst [smem:[#allocation9_spill]] %s2541_s21  ;;  %s2235_s0 = sshll.u32 %s2532_s23, 4 }
  0x26   : > { %s2546_s18 = scalar_lea.vmem %s2880_s17, %s2232_s28  ;;  %s2888_s7 = sld [smem:[#allocation20_spill]] }
  0x27   : > { %s2551_s25 = scalar_lea.vmem %s2881_s19, %s2232_s28  ;;  %s2273_s19 = smul.u32 96, %s2532_s23 }
  0x28   : > { %2882 = sst [smem:[#allocation10_spill]] %s2551_s25  ;;  %s2557_s2 = scalar_lea.vmem %s2883_s4, %s2031_s3 }
  0x29   : > { %2884 = sst [smem:[#allocation11_spill]] %s2557_s2  ;;  %s2562_s21 = scalar_lea.vmem %s2885_s5, %s2031_s3 }
  0x2a   : > { %s2567_s1 = scalar_lea.vmem %s2886_s6, %s2031_s3  ;;  %s2272_s3 = smul.u32 48, %s2532_s23 }
  0x2b   : > { %2887 = sst [smem:[#allocation12_spill]] %s2567_s1  ;;  %s874_s5 = scalar_lea.vmem %s2844_s15, %s2532_s23 }
  0x2c   : > { %s2573_s30 = scalar_lea.vmem %s2888_s7, %s2235_s0  ;;  %s2600_s4 = scalar_lea.vmem %s2840_s11, %s2272_s3 }
  0x2d   : > { %s2609_s22 = scalar_lea.vmem %s2842_s13, %s2273_s19  ;;  %s2891_s1 = sld [smem:[#allocation23_spill]] }
  0x2e   : > { %s2892_s7 = sld [smem:[#allocation26_spill]] }
  0x2f   : > { %s2893_s3 = sld [smem:[#allocation3_spill]] }
  0x33   : > { %s877_s12 = scalar_lea.vmem %s2891_s1, %s2532_s23 }
  0x34   : > { %s2618_s14 = scalar_lea.vmem %s2892_s7, %s2231_s24 }
  0x35   : > { %p2039_p7 = scmp.ne.s32.totalorder %s2893_s3, 0 }
  0x37   : > { %886 = sbr.rel (%p2039_p7) target bundleno = 65 (0x41), region = 100 }
  0x3c   : > { %v2269_v0 = vld [vmem:[%s814_s27] sm:$0xff]   ;;  %vm891_vm0 = vcmask 261120  }
  0x3d   : > { %v2270_v1 = vunpack.c.l.bf16 %v2269_v0  ;;  %v2271_v2 = vunpack.c.h.bf16 %v2269_v0 }
  0x3f   : > { %892 = vst.msk [vmem:[#allocation2] sm:$0xff] %vm891_vm0, %v2270_v1 }
  0x40   : > { %893 = vst.msk [vmem:[#allocation2 + $0x8] sm:$0xff] %vm891_vm0, %v2271_v2 }
  0x41 PF: > { %s2894_s17 = sld [smem:[#allocation9_spill]]  ;;  %v2239_v4 = vld [vmem:[%s2546_s18 + $0x8] sm:$0xff]  ;;  %v2238_v6 = vld [vmem:[%s2546_s18] sm:$0xff]  ;;  %vm917_vm1 = vcmask 261120   ;;  %v2246_v12 = vld [vmem:[%s2546_s18 + $0x18] sm:$0xff]  ;;  %vm1005_vm2 = vcmask 130048   ;;  %s2898_s27 = scalar_lea.vmem %s2837_s8, %s2532_s23 }
  0x42   : > { %s2895_s1 = sld [smem:[#allocation10_spill]]  ;;  %961 = vmatpush.bf16.msra.mxu1 %v2239_v4  ;;  %v2245_v13 = vld [vmem:[%s2546_s18 + $0x10] sm:$0xff]  ;;  %v2317_v16 = vld [vmem:[%s2562_s21] ss:$0 sm:$0xff]  ;;  %v2319_v40 = vld [vmem:[%s2562_s21 + $0x1] ss:$0 sm:$0xff]  ;;  %s2899_s19 = scalar_lea.vmem %s2838_s9, %s2532_s23 }
  0x43   : > { %s2896_s7 = sld [smem:[#allocation11_spill]]  ;;  %v2242_v1 = vld [vmem:[%s2573_s30] sm:$0xff]  ;;  %s2900_s25 = scalar_lea.vmem %s2839_s10, %s2532_s23  ;;  %vm1566_vm14 = vcmask 523264  }
  0x44   : > { %s2897_s24 = sld [smem:[#allocation12_spill]] }
  0x45   : > { %s2901_s6 = sld [smem:[#allocation21_spill]] }
  0x46   : > { %v2625_v7 = vld [vmem:[#allocation2] sm:$0xff]  ;;  %962 = vmatpush.bf16.msra.mxu1 %v2238_v6  ;;  %s2903_s28 = sld [smem:[#allocation22_spill]] }
  0x47   : > { %v2237_v3 = vld [vmem:[%s2894_s17 + $0x8] sm:$0xff]  ;;  %v2236_v5 = vld [vmem:[%s2894_s17] sm:$0xff]  ;;  %v2244_v27 = vld [vmem:[%s2894_s17 + $0x18] sm:$0xff] }
  0x48   : > { %927 = vmatpush.bf16.msra.mxu0 %v2237_v3  ;;  %v2627_v8 = vld [vmem:[#allocation2 + $0x8] sm:$0xff]  ;;  %v2240_v11 = vld [vmem:[%s2895_s1] sm:$0xff]  ;;  %v2243_v28 = vld [vmem:[%s2894_s17 + $0x10] sm:$0xff] }
  0x49   : > { %v2631_v9 = vpack.c.bf16 %v2627_v8, %v2625_v7  ;;  %v2241_v10 = vld [vmem:[%s2895_s1 + $0x8] sm:$0xff]  ;;  %v2316_v20 = vld [vmem:[%s2896_s7] ss:$0 sm:$0xff]  ;;  %v2248_v49 = vld [vmem:[%s2895_s1 + $0x18] sm:$0xff] }
  0x4a   : > { %995 = vmatpush.bf16.msra.mxu2 %v2241_v10  ;;  %1098 = vmatpush.bf16.msrb.mxu1 %v2244_v27  ;;  %v2318_v30 = vld [vmem:[%s2897_s24] ss:$0 sm:$0xff]  ;;  %v2320_v59 = vld [vmem:[%s2896_s7 + $0x1] ss:$0 sm:$0xff]  ;;  %v2247_v0 = vld [vmem:[%s2895_s1 + $0x10] sm:$0xff] }
  0x4b   : > { %2057 = vmatmul.msk.bf16.vlgmr.msra.gmra.mxu1 %vm917_vm1, %v2631_v9  ;;  %s2902_s20 = scalar_lea.vmem %s2901_s6, %s2532_s23 }
  0x4c   : > { %928 = vmatpush.bf16.msra.mxu0 %v2236_v5  ;;  %s2904_s3 = scalar_lea.vmem %s2903_s28, %s2532_s23 }
  0x4e   : > { %996 = vmatpush.bf16.msra.mxu2 %v2240_v11  ;;  %1099 = vmatpush.bf16.msrb.mxu1 %v2243_v28 }
  0x4f   : > { %2048 = vmatmul.msk.bf16.vlgmr.msra.gmra.mxu0 %vm917_vm1, %v2631_v9 }
  0x51   : > { %2066 = vmatmul.msk.bf16.vlgmr.msra.gmra.mxu2 %vm917_vm1, %v2631_v9 }
  0x52   : > { %1134 = vmatpush.bf16.msrb.mxu2 %v2246_v12 }
  0x56   : > { %1135 = vmatpush.bf16.msrb.mxu2 %v2245_v13 }
  0x5b   : > { %2082 = vmatmul.msk.bf16.vlgmr.msrb.gmra.mxu1 %vm917_vm1, %v2631_v9 }
  0x61   : > { %2096 = vmatmul.msk.bf16.vlgmr.msrb.gmra.mxu2 %vm917_vm1, %v2631_v9 }
  0xc8   : > { %v964_v14 = vpop.f32.mrf.mxu1 }
  0xc9   : > { %v965_v18 = vadd.f32 %v2317_v16, %v964_v14 }
  0xcc   : > { %v930_v15 = vpop.f32.mrf.mxu0 }
  0xcd   : > { %v931_v24 = vadd.f32 %v2316_v20, %v930_v15 }
  0xd0   : > { %v966_v17 = vpop.f32.mrf.mxu1 }
  0xd1   : > { %v967_v19 = vadd.f32 %v2317_v16, %v966_v17 }
  0xd3   : > { %v1004_v21 = vpack.c.bf16 %v967_v19, %v965_v18  ;;  %v2321_v18 = vld [vmem:[%s2897_s24 + $0x1] ss:$0 sm:$0xff] }
  0xd4   : > { %v932_v22 = vpop.f32.mrf.mxu0  ;;  %v998_v29 = vpop.f32.mrf.mxu2 }
  0xd5   : > { %v1010_v23 = vsel %vm1005_vm2, %v1004_v21, 0  ;;  %v933_v25 = vadd.f32 %v2316_v20, %v932_v22  ;;  %v999_v31 = vadd.f32 %v2318_v30, %v998_v29 }
  0xd6   : > { %1019 = vmatpush.bf16.xpose.msra.mxu3 %v1010_v23 }
  0xd7   : > { %v1003_v26 = vpack.c.bf16 %v933_v25, %v931_v24 }
  0xd8   : > { %v1101_v56 = vpop.f32.mrf.mxu1 }
  0xd9   : > { %v1102_v61 = vadd.f32 %v2320_v59, %v1101_v56 }
  0xdc   : > { %v1000_v32 = vpop.f32.mrf.mxu2 }
  0xdd   : > { %2067 = vmatmul.msk.bf16.vlgmr.msra.gmra.mxu3 %vm1005_vm2, %v1003_v26  ;;  %v1001_v33 = vadd.f32 %v2318_v30, %v1000_v32 }
  0xde   : > { %1170 = vmatpush.bf16.msrb.mxu3 %v2248_v49 }
  0xdf   : > { %v1047_v34 = vpack.c.bf16 %v1001_v33, %v999_v31 }
  0xe0   : > { %v1103_v60 = vpop.f32.mrf.mxu1 }
  0xe1   : > { %1058 = vmatpush.bf16.msrb.mxu0 %v1047_v34  ;;  %v1104_v62 = vadd.f32 %v2320_v59, %v1103_v60  ;;  %v2249_v34 = vld [vmem:[%s2573_s30 + $0x8] sm:$0xff] }
  0xe2   : > { %1171 = vmatpush.bf16.msrb.mxu3 %v2247_v0  ;;  %1261 = vmatpush.bf16.msra.mxu2 %v2249_v34 }
  0xe3   : > { %v1178_v63 = vpack.c.bf16 %v1104_v62, %v1102_v61 }
  0xe4   : > { %v1137_v39 = vpop.f32.mrf.mxu2 }
  0xe5   : > { %v1138_v41 = vadd.f32 %v2319_v40, %v1137_v39 }
  0xe6   : > { %1284 = vmatpush.bf16.msra.mxu3 %v2242_v1 }
  0xec   : > { %v1139_v42 = vpop.f32.mrf.mxu2 }
  0xed   : > { %v1140_v43 = vadd.f32 %v2319_v40, %v1139_v42  ;;  %2110 = vmatmul.msk.bf16.vlgmr.msrb.gmra.mxu3 %vm917_vm1, %v2631_v9 }
  0xef   : > { %v1179_v44 = vpack.c.bf16 %v1140_v43, %v1138_v41 }
  0xf1   : > { %v1184_v45 = vsel %vm1005_vm2, %v1179_v44, 0 }
  0xf2   : > { %1193 = vmatpush.bf16.xpose.msra.mxu0 %v1184_v45  ;;  %v2322_v45 = vld [vmem:[%s2898_s27] ss:$0 sm:$0xff] }
 0x160   : > { %v1021_v35 = vpop.f32.mrf.mxu3 }
 0x161   : > { %v1026_v36 = vsel %vm1005_vm2, %v1021_v35, -inf }
 0x162   : > { %1027 = vmax.xlane.f32.xlu0 %v1026_v36 }
 0x168   : > { %v1023_v37 = vpop.f32.mrf.mxu3 }
 0x169   : > { %v1029_v38 = vsel %vm1005_vm2, %v1023_v37, -inf }
 0x16a   : > { %1030 = vmax.xlane.f32.xlu0 %v1029_v38 }
 0x170   : > { %v1173_v17 = vpop.f32.mrf.mxu3 }
 0x171   : > { %v1174_v19 = vadd.f32 %v2321_v18, %v1173_v17  ;;  %v2254_v17 = vld [vmem:[%s2600_s4 + $0x20] sm:$0xff] }
 0x178   : > { %v1175_v20 = vpop.f32.mrf.mxu3 }
 0x179   : > { %v1176_v21 = vadd.f32 %v2321_v18, %v1175_v20  ;;  %v2250_v18 = vld [vmem:[%s2600_s4] sm:$0xff] }
 0x17b   : > { %v1221_v22 = vpack.c.bf16 %v1176_v21, %v1174_v19 }
 0x17d   : > { %1232 = vmatpush.bf16.msra.mxu1 %v1221_v22 }
 0x1d5   : > { %v1028_v46 = vpop.xlane.xlu0 %1027 }
 0x1d6   : > { %v1032_v47 = vsub.f32 %v1021_v35, %v1028_v46 }
 0x1d8   : > { %v1034_v48 = vmul.f32 1.442695, %v1032_v47 }
 0x1da   : > { %2329 = vpow2.f32 %v1034_v48 }
 0x1dd   : > { %v1031_v50 = vpop.xlane.xlu0 %1030 }
 0x1de   : > { %v1033_v51 = vsub.f32 %v1023_v37, %v1031_v50 }
 0x1e0   : > { %v2330_v52 = vpop.eup %2329  ;;  %v1036_v53 = vmul.f32 1.442695, %v1033_v51 }
 0x1e1   : > { %v1038_v54 = vsel %vm1005_vm2, %v2330_v52, 0.0 }
 0x1e2   : > { %2331 = vpow2.f32 %v1036_v53  ;;  %1039 = vadd.xlane.f32.xlu2 %v1038_v54 }
 0x1e8   : > { %v2332_v55 = vpop.eup %2331 }
 0x1e9   : > { %v1041_v57 = vsel %vm1005_vm2, %v2332_v55, 0.0  ;;  %v1046_v58 = vpack.c.bf16 %v2332_v55, %v2330_v52 }
 0x1ea   : > { %1042 = vadd.xlane.f32.xlu2 %v1041_v57  ;;  %v2396_v57 = vmov 32.0  }
 0x1eb   : > { %2068 = vmatmul.msk.bf16.vlgmr.msrb.gmra.mxu0 %vm1005_vm2, %v1046_v58 }
 0x1fb   : > { %2111 = vmatmul.msk.bf16.vlgmr.msra.gmra.mxu0 %vm1005_vm2, %v1178_v63 }
 0x255   : > { %v1040_v2 = vpop.xlane.xlu2 %1039 }
 0x256   : > { %2333 = vrcp.f32 %v1040_v2 }
 0x25c   : > { %v2334_v5 = vpop.eup %2333 }
 0x25d   : > { %v1043_v3 = vpop.xlane.xlu2 %1042 }
 0x25e   : > { %2335 = vrcp.f32 %v1043_v3 }
 0x264   : > { %v2336_v6 = vpop.eup %2335 }
 0x268   : > { %v1060_v4 = vpop.f32.mrf.mxu0 }
 0x269   : > { %v1065_v11 = vmul.f32 %v2334_v5, %v1060_v4 }
 0x270   : > { %v1062_v10 = vpop.f32.mrf.mxu0 }
 0x271   : > { %v1066_v12 = vmul.f32 %v2336_v6, %v1062_v10 }
 0x273   : > { %v1067_v13 = vpack.c.bf16 %v1066_v12, %v1065_v11  ;;  %v2253_v11 = vld [vmem:[%s2600_s4 + $0x18] sm:$0xff] }
 0x274   : > { %1416 = vmatpush.bf16.msrb.mxu0 %v2253_v11  ;;  %v2264_v11 = vld [vmem:[%s2609_s22 + $0x40] sm:$0xff] }
 0x275   : > { %2124 = vmatmul.msk.bf16.vlgmr.msra.gmra.mxu3 %vm1005_vm2, %v1067_v13 }
 0x278   : > { %v1195_v14 = vpop.f32.mrf.mxu0 }
 0x279   : > { %v1200_v15 = vsel %vm1005_vm2, %v1195_v14, -inf }
 0x27a   : > { %1201 = vmax.xlane.f32.xlu1 %v1200_v15  ;;  %v2251_v15 = vld [vmem:[%s2600_s4 + $0x8] sm:$0xff] }
 0x27b   : > { %1445 = vmatpush.bf16.msrb.mxu1 %v2251_v15 }
 0x27f   : > { %1446 = vmatpush.bf16.msrb.mxu1 %v2250_v18 }
 0x280   : > { %v1197_v9 = vpop.f32.mrf.mxu0 }
 0x281   : > { %v1203_v16 = vsel %vm1005_vm2, %v1197_v9, -inf }
 0x282   : > { %1204 = vmax.xlane.f32.xlu1 %v1203_v16 }
 0x2ed   : > { %v1202_v23 = vpop.xlane.xlu1 %1201 }
 0x2ee   : > { %v1206_v24 = vsub.f32 %v1195_v14, %v1202_v23  ;;  %v2255_v14 = vld [vmem:[%s2600_s4 + $0x28] sm:$0xff] }
 0x2ef   : > { %1499 = vmatpush.bf16.msrb.mxu2 %v2255_v14 }
 0x2f0   : > { %v1208_v25 = vmul.f32 1.442695, %v1206_v24 }
 0x2f2   : > { %2337 = vpow2.f32 %v1208_v25 }
 0x2f3   : > { %1500 = vmatpush.bf16.msrb.mxu2 %v2254_v17 }
 0x2f5   : > { %v1205_v26 = vpop.xlane.xlu1 %1204 }
 0x2f6   : > { %v1207_v27 = vsub.f32 %v1197_v9, %v1205_v26  ;;  %v2252_v9 = vld [vmem:[%s2600_s4 + $0x10] sm:$0xff] }
 0x2f7   : > { %1417 = vmatpush.bf16.msrb.mxu0 %v2252_v9 }
 0x2f8   : > { %v2338_v28 = vpop.eup %2337  ;;  %v1210_v29 = vmul.f32 1.442695, %v1207_v27  ;;  %v1286_v44 = vpop.f32.mrf.mxu3 }
 0x2f9   : > { %v1212_v30 = vsel %vm1005_vm2, %v2338_v28, 0.0 }
 0x2fa   : > { %2339 = vpow2.f32 %v1210_v29  ;;  %1213 = vadd.xlane.f32.xlu0 %v1212_v30  ;;  %v1362_v30 = vlaneseq }
 0x300   : > { %v2340_v31 = vpop.eup %2339  ;;  %v1288_v51 = vpop.f32.mrf.mxu3 }
 0x301   : > { %v1220_v32 = vpack.c.bf16 %v2340_v31, %v2338_v28  ;;  %v1215_v33 = vsel %vm1005_vm2, %v2340_v31, 0.0 }
 0x302   : > { %1216 = vadd.xlane.f32.xlu1 %v1215_v33  ;;  %v2323_v33 = vld [vmem:[%s2899_s19] ss:$0 sm:$0xff] }
 0x303   : > { %2112 = vmatmul.msk.bf16.vlgmr.msra.gmra.mxu1 %vm1005_vm2, %v1220_v32 }
 0x36d   : > { %v1214_v35 = vpop.xlane.xlu0 %1213 }
 0x36e   : > { %2341 = vrcp.f32 %v1214_v35 }
 0x374   : > { %v2342_v38 = vpop.eup %2341 }
 0x375   : > { %v1217_v36 = vpop.xlane.xlu1 %1216 }
 0x376   : > { %2343 = vrcp.f32 %v1217_v36  ;;  %v2705_v36 = vshrl.u32 %v1362_v30, 7 }
 0x377   : > { %2345 = vrcp.f32 %v2396_v57 }
 0x378   : > { %vm1367_vm10 = vcmp.lt.s32.totalorder %v2705_v36, 1  ;;  %vm1455_vm12 = vcmp.lt.s32.totalorder %v2705_v36, 7 }
 0x37c   : > { %v2344_v39 = vpop.eup %2343 }
 0x37d   : > { %v2346_v58 = vpop.eup %2345 }
 0x37e   : > { %v1308_v59 = vmul.f32 32.0, %v2346_v58  ;;  %vm1312_vm3 = vweird.f32 %v2346_v58 }
 0x380   : > { %v1234_v37 = vpop.f32.mrf.mxu1  ;;  %v1309_v60 = vsub.f32 1.0, %v1308_v59 }
 0x381   : > { %v1239_v41 = vmul.f32 %v2342_v38, %v1234_v37  ;;  %v2324_v38 = vld [vmem:[%s2900_s25] ss:$0 sm:$0xff] }
 0x382   : > { %v1310_v61 = vmul.f32 %v2346_v58, %v1309_v60 }
 0x388   : > { %v1236_v40 = vpop.f32.mrf.mxu1 }
 0x389   : > { %v1240_v42 = vmul.f32 %v2344_v39, %v1236_v40 }
 0x38b   : > { %v1241_v43 = vpack.c.bf16 %v1240_v42, %v1239_v41  ;;  %v1364_v41 = vadd.s32 8, %v2705_v36 }
 0x38d   : > { %2119 = vmatmul.msk.bf16.vlgmr.msra.gmra.mxu2 %vm1005_vm2, %v1241_v43 }
 0x410   : > { %v1263_v46 = vpop.f32.mrf.mxu2 }
 0x411   : > { %v1287_v47 = vadd.f32 %v1286_v44, %v1263_v46  ;;  %v2718_v46 = vadd.s32 1, %v1364_v41 }
 0x413   : > { %v1295_v48 = vadd.f32 %v2322_v45, %v1287_v47  ;;  %vm1463_vm13 = vcmp.lt.s32.totalorder %v2718_v46, 16 }
 0x415   : > { %v1297_v49 = vadd.f32 %v1295_v48, %v2625_v7  ;;  %v1311_v7 = vadd.f32 %v2346_v58, %v1310_v61 }
 0x417   : > { %v1301_v50 = vsel %vm917_vm1, %v1297_v49, 0.0  ;;  %v2686_v62 = vsel %vm1312_vm3, %v2346_v58, %v1311_v7  ;;  %v2263_v7 = vld [vmem:[%s2609_s22 + $0x38] sm:$0xff] }
 0x418   : > { %v1265_v52 = vpop.f32.mrf.mxu2  ;;  %1302 = vadd.xlane.f32.xlu2 %v1301_v50  ;;  %1574 = vmatpush.bf16.msrb.mxu3 %v2263_v7 }
 0x419   : > { %v1289_v53 = vadd.f32 %v1288_v51, %v1265_v52 }
 0x41b   : > { %v1296_v54 = vadd.f32 %v2322_v45, %v1289_v53  ;;  %v2716_v45 = vadd.s32 4294967295, %v2705_v36  ;;  %v2326_v36 = vld [vmem:[%s2904_s3] ss:$0 sm:$0xff] }
 0x41d   : > { %v1298_v55 = vadd.f32 %v1296_v54, %v2627_v8  ;;  %vm1372_vm11 = vcmp.ge.s32.totalorder %v2716_v45, 0 }
 0x41f   : > { %v1304_v56 = vsel %vm917_vm1, %v1298_v55, 0.0 }
 0x420   : > { %1305 = vadd.xlane.f32.xlu0 %v1304_v56 }
 0x48b   : > { %v1303_v63 = vpop.xlane.xlu2 %1302 }
 0x48c   : > { %v1314_v0 = vmul.f32 %v2686_v62, %v1303_v63  ;;  %v2262_v63 = vld [vmem:[%s2609_s22 + $0x30] sm:$0xff] }
 0x48d   : > { %1575 = vmatpush.bf16.msrb.mxu3 %v2262_v63 }
 0x48e   : > { %v1316_v8 = vsub.f32 %v1297_v49, %v1314_v0  ;;  %v2259_v0 = vld [vmem:[%s2609_s22 + $0x18] sm:$0xff] }
 0x48f   : > { %1615 = vmatpush.bf16.msra.mxu0 %v2259_v0 }
 0x490   : > { %v1318_v1 = vmul.f32 %v1316_v8, %v1316_v8 }
 0x492   : > { %v1320_v2 = vsel %vm917_vm1, %v1318_v1, 0.0  ;;  %v2261_v1 = vld [vmem:[%s2609_s22 + $0x28] sm:$0xff] }
 0x493   : > { %v1306_v3 = vpop.xlane.xlu0 %1305  ;;  %1321 = vadd.xlane.f32.xlu1 %v1320_v2  ;;  %v2258_v2 = vld [vmem:[%s2609_s22 + $0x10] sm:$0xff]  ;;  %1576 = vmatpush.bf16.msrb.mxu3 %v2261_v1 }
 0x494   : > { %v1315_v4 = vmul.f32 %v2686_v62, %v1306_v3  ;;  %v2266_v3 = vld [vmem:[%s2609_s22 + $0x50] sm:$0xff]  ;;  %1616 = vmatpush.bf16.msra.mxu0 %v2258_v2 }
 0x496   : > { %v1317_v5 = vsub.f32 %v1298_v55, %v1315_v4  ;;  %v2260_v4 = vld [vmem:[%s2609_s22 + $0x20] sm:$0xff] }
 0x497   : > { %1577 = vmatpush.bf16.msrb.mxu3 %v2260_v4 }
 0x498   : > { %v1319_v6 = vmul.f32 %v1317_v5, %v1317_v5 }
 0x49a   : > { %v1323_v10 = vsel %vm917_vm1, %v1319_v6, 0.0  ;;  %v2265_v6 = vld [vmem:[%s2609_s22 + $0x48] sm:$0xff] }
 0x49b   : > { %1324 = vadd.xlane.f32.xlu2 %v1323_v10  ;;  %v2256_v10 = vld [vmem:[%s2609_s22] sm:$0xff] }
 0x506   : > { %v1322_v12 = vpop.xlane.xlu1 %1321 }
 0x507   : > { %v1326_v13 = vmul.f32 %v1322_v12, %v2686_v62 }
 0x509   : > { %v1328_v16 = vadd.f32 1e-05, %v1326_v13 }
 0x50b   : > { %2347 = vrsqrt.f32 %v1328_v16  ;;  %vm1336_vm5 = vweird.f32 %v1328_v16 }
 0x50e   : > { %v1325_v19 = vpop.xlane.xlu2 %1324 }
 0x50f   : > { %v1327_v20 = vmul.f32 %v1325_v19, %v2686_v62 }
 0x511   : > { %v2348_v21 = vpop.eup %2347  ;;  %v1329_v22 = vadd.f32 1e-05, %v1327_v20 }
 0x512   : > { %v1331_v23 = vmul.f32 %v2348_v21, %v1328_v16  ;;  %vm1337_vm4 = vweird.f32 %v2348_v21  ;;  %v2325_v16 = vld [vmem:[%s2902_s20] ss:$0 sm:$0xff] }
 0x513   : > { %2349 = vrsqrt.f32 %v1329_v22  ;;  %vm1338_vm6 = vmor %vm1336_vm5, %vm1337_vm4  ;;  %vm1346_vm8 = vweird.f32 %v1329_v22 }
 0x514   : > { %v1332_v24 = vmul.f32 %v2348_v21, %v1331_v23 }
 0x516   : > { %v1333_v25 = vmul.f32 0.5, %v1332_v24 }
 0x518   : > { %v1334_v26 = vsub.f32 1.5, %v1333_v25 }
 0x519   : > { %v2350_v27 = vpop.eup %2349 }
 0x51a   : > { %v1335_v28 = vmul.f32 %v2348_v21, %v1334_v26  ;;  %v1341_v29 = vmul.f32 %v2350_v27, %v1329_v22  ;;  %vm1347_vm7 = vweird.f32 %v2350_v27 }
 0x51b   : > { %vm1348_vm9 = vmor %vm1346_vm8, %vm1347_vm7 }
 0x51c   : > { %v1339_v31 = vsel %vm1338_vm6, %v2348_v21, %v1335_v28  ;;  %v1342_v32 = vmul.f32 %v2350_v27, %v1341_v29 }
 0x51d   : > { %v1350_v34 = vmul.f32 %v1339_v31, %v1316_v8  ;;  %v2267_v8 = vld [vmem:[%s2609_s22 + $0x58] sm:$0xff] }
 0x51e   : > { %v1343_v35 = vmul.f32 0.5, %v1342_v32  ;;  %1672 = vmatpush.bf16.msra.mxu1 %v2267_v8 }
 0x51f   : > { %v1355_v39 = vmul.f32 %v2323_v33, %v1350_v34 }
 0x520   : > { %v1344_v37 = vsub.f32 1.5, %v1343_v35 }
 0x521   : > { %v2713_v44 = vadd.f32 %v2324_v38, %v1355_v39 }
 0x522   : > { %v1345_v40 = vmul.f32 %v2350_v27, %v1344_v37  ;;  %1673 = vmatpush.bf16.msra.mxu1 %v2266_v3 }
 0x523   : > { %v1365_v49 = vrot.slane %v2713_v44, 7  ;;  %v1453_v52 = vrot.slane %v2713_v44, 1 }
 0x524   : > { %v1349_v42 = vsel %vm1348_vm9, %v2350_v27, %v1345_v40 }
 0x525   : > { %v1351_v43 = vmul.f32 %v1349_v42, %v1317_v5  ;;  %v2257_v5 = vld [vmem:[%s2609_s22 + $0x8] sm:$0xff] }
 0x526   : > { %1617 = vmatpush.bf16.msra.mxu0 %v2257_v5  ;;  %1674 = vmatpush.bf16.msra.mxu1 %v2265_v6 }
 0x527   : > { %v1356_v47 = vmul.f32 %v2323_v33, %v1351_v43 }
 0x529   : > { %v2720_v48 = vadd.f32 %v2324_v38, %v1356_v47 }
 0x52a   : > { %1618 = vmatpush.bf16.msra.mxu0 %v2256_v10  ;;  %1675 = vmatpush.bf16.msra.mxu1 %v2264_v11 }
 0x52b   : > { %v1389_v50 = vpack.c.bf16 %v2720_v48, %v2713_v44  ;;  %v1366_v51 = vrot.slane %v2720_v48, 7  ;;  %v1454_v53 = vrot.slane %v2720_v48, 1 }
 0x52d   : > { %2137 = vmatmul.msk.bf16.vlgmr.msrb.gmra.mxu0 %vm917_vm1, %v1389_v50  ;;  %v1368_v54 = vsel %vm1367_vm10, %v1365_v49, %v1366_v51  ;;  %v1369_v55 = vsel %vm1367_vm10, %v1366_v51, %v1365_v49  ;;  %v1456_v56 = vsel %vm1455_vm12, %v1453_v52, %v1454_v53  ;;  %v1457_v57 = vsel %vm1455_vm12, %v1454_v53, %v1453_v52 }
 0x52e   : > { %v1382_v58 = vsel %vm1372_vm11, %v1369_v55, 0.0  ;;  %v1471_v59 = vsel %vm1463_vm13, %v1457_v57, 0.0 }
 0x52f   : > { %v1384_v60 = vpack.c.bf16 %v1368_v54, %v1382_v58  ;;  %v1472_v61 = vpack.c.bf16 %v1471_v59, %v1456_v56 }
 0x531   : > { %2146 = vmatmul.msk.bf16.vlgmr.msrb.gmra.mxu1 %vm917_vm1, %v1384_v60  ;;  %2159 = vmatmul.msk.bf16.vlgmr.msrb.gmra.mxu2 %vm917_vm1, %v1472_v61 }
 0x5aa   : > { %v1419_v13 = vpop.f32.mrf.mxu0 }
 0x5ae   : > { %v1448_v12 = vpop.f32.mrf.mxu1 }
 0x5af   : > { %v1449_v14 = vadd.f32 %v1448_v12, %v1419_v13 }
 0x5b2   : > { %v1421_v18 = vpop.f32.mrf.mxu0 }
 0x5b4   : > { %v1502_v15 = vpop.f32.mrf.mxu2 }
 0x5b5   : > { %v1507_v9 = vadd.f32 %v1502_v15, %v1449_v14 }
 0x5b6   : > { %v1450_v17 = vpop.f32.mrf.mxu1 }
 0x5b7   : > { %v1513_v19 = vadd.f32 %v2325_v16, %v1507_v9  ;;  %v1451_v20 = vadd.f32 %v1450_v17, %v1421_v18  ;;  %v2327_v17 = vld [vmem:[%s874_s5] ss:$0 sm:$0xff]  ;;  %s2906_s5 = sld [smem:[#allocation3_spill]] }
 0x5b9   : > { %v1515_v23 = vmax.f32 %v1513_v19, 0.0  ;;  %v2328_v19 = vld [vmem:[%s877_s12] ss:$0 sm:$0xff] }
 0x5bb   : > { %v1517_v26 = vrot.slane %v1515_v23, 7  ;;  %v1625_v27 = vrot.slane %v1515_v23, 1 }
 0x5bc   : > { %v1504_v21 = vpop.f32.mrf.mxu2 }
 0x5bd   : > { %v1508_v22 = vadd.f32 %v1504_v21, %v1451_v20  ;;  %p2227_p8 = scmp.ne.s32.totalorder %s2906_s5, 1 }
 0x5be   : > { %s2907_s21 = sld [smem:[#allocation25_spill]] (!%p2227_p8) }
 0x5bf   : > { %v1514_v24 = vadd.f32 %v2325_v16, %v1508_v22  ;;  %s2908_s30 = sld [smem:[#allocation24_spill]] (!%p2227_p8) }
 0x5c1   : > { %v1516_v25 = vmax.f32 %v1514_v24, 0.0 }
 0x5c3   : > { %v1518_v28 = vrot.slane %v1516_v25, 7  ;;  %v1532_v29 = vpack.c.bf16 %v1516_v25, %v1515_v23  ;;  %v1626_v30 = vrot.slane %v1516_v25, 1 }
 0x5c5   : > { %v1519_v31 = vsel %vm1367_vm10, %v1517_v26, %v1518_v28  ;;  %v1520_v32 = vsel %vm1367_vm10, %v1518_v28, %v1517_v26  ;;  %v1627_v33 = vsel %vm1455_vm12, %v1625_v27, %v1626_v30  ;;  %v1628_v34 = vsel %vm1455_vm12, %v1626_v30, %v1625_v27  ;;  %2184 = vmatmul.msk.bf16.vlgmr.msrb.gmra.mxu3 %vm1566_vm14, %v1532_v29 }
 0x5c6   : > { %v1521_v35 = vsel %vm1372_vm11, %v1520_v32, 0.0  ;;  %v1630_v37 = vsel %vm1463_vm13, %v1628_v34, 0.0 }
 0x5c7   : > { %v1523_v38 = vpack.c.bf16 %v1519_v31, %v1521_v35  ;;  %v1631_v39 = vpack.c.bf16 %v1630_v37, %v1627_v33 }
 0x5c9   : > { %2201 = vmatmul.msk.bf16.vlgmr.msra.gmra.mxu0 %vm1566_vm14, %v1523_v38  ;;  %2226 = vmatmul.msk.bf16.vlgmr.msra.gmra.mxu1 %vm1566_vm14, %v1631_v39 }
 0x646   : > { %v1620_v40 = vpop.f32.mrf.mxu0  ;;  %v1677_v41 = vpop.f32.mrf.mxu1 }
 0x648   : > { %v1579_v42 = vpop.f32.mrf.mxu3 }
 0x649   : > { %v1621_v43 = vadd.f32 %v1620_v40, %v1579_v42 }
 0x64b   : > { %v1682_v47 = vadd.f32 %v1677_v41, %v1621_v43 }
 0x64d   : > { %v1688_v49 = vadd.f32 %v2326_v36, %v1682_v47 }
 0x64e   : > { %v1622_v50 = vpop.f32.mrf.mxu0  ;;  %v1679_v53 = vpop.f32.mrf.mxu1 }
 0x64f   : > { %v1690_v45 = vadd.f32 %v1688_v49, %v2713_v44 }
 0x650   : > { %v1581_v46 = vpop.f32.mrf.mxu3 }
 0x651   : > { %v1623_v51 = vadd.f32 %v1622_v50, %v1581_v46  ;;  %v1694_v52 = vsel %vm917_vm1, %v1690_v45, 0.0 }
 0x652   : > { %1695 = vadd.xlane.f32.xlu0 %v1694_v52 }
 0x653   : > { %v1683_v54 = vadd.f32 %v1679_v53, %v1623_v51 }
 0x655   : > { %v1689_v55 = vadd.f32 %v2326_v36, %v1683_v54 }
 0x657   : > { %v1691_v56 = vadd.f32 %v1689_v55, %v2720_v48 }
 0x659   : > { %v1697_v57 = vsel %vm917_vm1, %v1691_v56, 0.0 }
 0x65a   : > { %1698 = vadd.xlane.f32.xlu1 %v1697_v57 }
 0x6c5   : > { %v1696_v58 = vpop.xlane.xlu0 %1695 }
 0x6c6   : > { %v1700_v59 = vmul.f32 %v1696_v58, %v2686_v62 }
 0x6c8   : > { %v1702_v60 = vsub.f32 %v1690_v45, %v1700_v59 }
 0x6ca   : > { %v1704_v61 = vmul.f32 %v1702_v60, %v1702_v60 }
 0x6cc   : > { %v1706_v44 = vsel %vm917_vm1, %v1704_v61, 0.0 }
 0x6cd   : > { %v1699_v7 = vpop.xlane.xlu1 %1698  ;;  %1707 = vadd.xlane.f32.xlu2 %v1706_v44 }
 0x6ce   : > { %v1701_v63 = vmul.f32 %v1699_v7, %v2686_v62 }
 0x6d0   : > { %v1703_v0 = vsub.f32 %v1691_v56, %v1701_v63 }
 0x6d2   : > { %v1705_v8 = vmul.f32 %v1703_v0, %v1703_v0 }
 0x6d4   : > { %v1709_v1 = vsel %vm917_vm1, %v1705_v8, 0.0 }
 0x6d5   : > { %1710 = vadd.xlane.f32.xlu0 %v1709_v1 }
 0x740   : > { %v1708_v48 = vpop.xlane.xlu2 %1707 }
 0x741   : > { %v1712_v2 = vmul.f32 %v1708_v48, %v2686_v62 }
 0x743   : > { %v1714_v3 = vadd.f32 1e-05, %v1712_v2 }
 0x745   : > { %2351 = vrsqrt.f32 %v1714_v3  ;;  %vm1722_vm0 = vweird.f32 %v1714_v3 }
 0x748   : > { %v1711_v4 = vpop.xlane.xlu0 %1710 }
 0x749   : > { %v1713_v5 = vmul.f32 %v1711_v4, %v2686_v62 }
 0x74b   : > { %v2352_v6 = vpop.eup %2351  ;;  %v1715_v10 = vadd.f32 1e-05, %v1713_v5 }
 0x74c   : > { %v1717_v11 = vmul.f32 %v2352_v6, %v1714_v3  ;;  %vm1723_vm15 = vweird.f32 %v2352_v6 }
 0x74d   : > { %2353 = vrsqrt.f32 %v1715_v10  ;;  %vm1724_vm3 = vmor %vm1722_vm0, %vm1723_vm15  ;;  %vm1732_vm5 = vweird.f32 %v1715_v10 }
 0x74e   : > { %v1718_v12 = vmul.f32 %v2352_v6, %v1717_v11 }
 0x750   : > { %v1719_v13 = vmul.f32 0.5, %v1718_v12 }
 0x752   : > { %v1720_v14 = vsub.f32 1.5, %v1719_v13 }
 0x753   : > { %v2354_v15 = vpop.eup %2353 }
 0x754   : > { %v1721_v9 = vmul.f32 %v2352_v6, %v1720_v14  ;;  %v1727_v16 = vmul.f32 %v2354_v15, %v1715_v10  ;;  %vm1733_vm4 = vweird.f32 %v2354_v15 }
 0x755   : > { %vm1734_vm6 = vmor %vm1732_vm5, %vm1733_vm4 }
 0x756   : > { %v1725_v62 = vsel %vm1724_vm3, %v2352_v6, %v1721_v9  ;;  %v1728_v18 = vmul.f32 %v2354_v15, %v1727_v16 }
 0x757   : > { %v1736_v20 = vmul.f32 %v1725_v62, %v1702_v60 }
 0x758   : > { %v1729_v21 = vmul.f32 0.5, %v1728_v18 }
 0x759   : > { %v1741_v22 = vmul.f32 %v2327_v17, %v1736_v20 }
 0x75a   : > { %v1730_v23 = vsub.f32 1.5, %v1729_v21 }
 0x75b   : > { %v1746_v24 = vadd.f32 %v2328_v19, %v1741_v22 }
 0x75c   : > { %v1731_v25 = vmul.f32 %v2354_v15, %v1730_v23 }
 0x75d   : > { %1748 = vst.msk [vmem:[#allocation2] sm:$0xff] %vm917_vm1, %v1746_v24 }
 0x75e   : > { %v1735_v26 = vsel %vm1734_vm6, %v2354_v15, %v1731_v25 }
 0x75f   : > { %v1737_v27 = vmul.f32 %v1735_v26, %v1703_v0 }
 0x761   : > { %v1742_v28 = vmul.f32 %v2327_v17, %v1737_v27  ;;  %1753 = sbr.rel (%p2227_p8) target bundleno = 2038 (0x7f6), region = 104 }
 0x763   : > { %v1747_v29 = vadd.f32 %v2328_v19, %v1742_v28 }
 0x765   : > { %1749 = vst.msk [vmem:[#allocation2 + $0x8] sm:$0xff] %vm917_vm1, %v1747_v29 }
 0x766   : > { %v1755_v30 = vpack.c.bf16 %v1747_v29, %v1746_v24  ;;  %v1756_v31 = vld [vmem:[%s2907_s21] sm:$0xff]  ;;  %v2397_v32 = vmov 0  }
 0x767   : > { %2355 = vset.pattern.permute.xlu0 %v2397_v32  ;;  %v1754_v34 = vld [vmem:[%s2908_s30] sm:$0xf] }
 0x768   : > { %v1766_v33 = vsel %vm917_vm1, %v1755_v30, 0  ;;  %1759 = vperm.xlu0 %2355, %v1756_v31  }
 0x769   : > { %1775 = vmatpush.bf16.xpose.msra.mxu0 %v1766_v33 }
 0x770   : > { %2228 = vmatmul.msk.bf16.vlgmr.msra.gmra.mxu0 %vm917_vm1, %v1754_v34 }
 0x7da   : > { %v1760_v35 = vpop.permute.xlu0 %1759 }
 0x7ed   : > { %v1777_v37 = vpop.f32.mrf.mxu0 }
 0x7ee   : > { %v1778_v38 = vadd.f32 %v1777_v37, %v1760_v35 }
 0x7f0   : > { %v1781_v39 = vsel %vm1005_vm2, %v1778_v38, 0.0 }
 0x7f1   : > { %1782 = vst [vmem:[%s2618_s14] sm:$0xff] %v1781_v39 }
 0x7f5   : > { %v1779_v40 = vpop.f32.mrf.mxu0 }
 0x7f6 PF: > { %s2909_s19 = sld [smem:[#allocation6_spill]] }
 0x7f7   : > { %s2910_s0 = sld [smem:[#allocation4_spill]] }
 0x7f8   : > { %s2911_s30 = sld [smem:[#allocation5_spill]] }
 0x7f9   : > { %s2912_s20 = sld [smem:[#allocation7_spill]] }
 0x7fa   : > { %s2913_s21 = sld [smem:[#allocation8_spill]] }
 0x7fc   : > { %s29_s1 = sadd.s32 1, %s2909_s19  }
 0x7fd   : > { %p26_p9 = scmp.ge.s32.totalorder %s29_s1, 6  }
 0x7ff   :  { %28 = sbr.rel (!%p26_p9) target bundleno = 15 (0xf), region = 193 }

</bundles_post_ra>
